<compile_context>
chip_gen: v6e
topology: v6e:2x2x1
jax: 0.10.0
libtpu: 0.0.40
codegen_flags: <defaults>
</compile_context>

<pallas_src>
import jax
import jax.numpy as jnp
import numpy as np
from jax import lax
from jax.experimental import pallas as pl
from jax.experimental.pallas import tpu as pltpu


def _round_up(x, m):
  return ((x + m - 1) // m) * m


# -----------------------------------------------------------------------------
# Pallas kernel: fused bi-GRU recurrence + word attention + classifier head
# -----------------------------------------------------------------------------
def _han_word_att_kernel(
    xaug_ref,    # (T*Bp, 2E)  rows = [x_t | x_{T-1-t}] for (t, b), time-major
    waug_ref,    # (2E, GW)    block input weights, gate lanes [r_f r_b z_f z_b n_f n_b pad]
    whb_ref,     # (2H, GW)    block-diagonal recurrent weights, same gate lanes
    bin_ref,     # (1, GW)     fused biases: r/z = bi+bh, n = bi only, pad = 0
    bhn_ref,     # (1, 2H)     [bh_n fwd | bh_n bwd] (stays inside r * (h_n + bh_n))
    ww_ref,      # (2H, 2H)    word-attention projection
    wb_ref,      # (1, 2H)
    cw_ref,      # (1, 2H)     context vector as a row (VPU mul + reduce)
    fcw_ref,     # (2H, CP)    classifier weights, lane-padded to CP
    fcb_ref,     # (1, CP)
    out_ref,     # (Bp, CP)    lane-dense padded logits
    hout_ref,    # (Bp, 2H)    final hidden [hf | hb]
    xp_scr,      # scratch (T*Bp, GW)  hoisted input projections
    fout_scr,    # scratch (T*Bp, 2H)  bi-GRU outputs in natural time order
):
  TB, GW = xp_scr.shape
  Bp = out_ref.shape[0]
  T = TB // Bp
  H2 = whb_ref.shape[0]            # 2*H
  H = H2 // 2

  # ---- hoisted input projections: ONE lane-dense matmul for both dirs -------
  xp_scr[...] = (
      jnp.dot(xaug_ref[...], waug_ref[...], preferred_element_type=jnp.float32)
      + bin_ref[...])

  whb = whb_ref[...]
  bhn = bhn_ref[...]

  # ---- sequential bi-GRU: ONE block-diagonal MXU op per step ----------------
  def step(t, h):                  # h = [hf(t) | hb(T-1-t)]  (Bp, 2H)
    row_f = pl.multiple_of(t * Bp, Bp)
    xp = xp_scr[pl.ds(row_f, Bp), :]                               # (Bp, GW)
    hp = jnp.dot(h, whb, preferred_element_type=jnp.float32)       # (Bp, GW)
    r = jax.nn.sigmoid(xp[:, 0:H2] + hp[:, 0:H2])
    z = jax.nn.sigmoid(xp[:, H2:2 * H2] + hp[:, H2:2 * H2])
    n = jnp.tanh(xp[:, 2 * H2:3 * H2] + r * (hp[:, 2 * H2:3 * H2] + bhn))
    h = (1.0 - z) * n + z * h
    # forward half belongs to time t, backward half to time T-1-t
    row_b = pl.multiple_of((T - 1 - t) * Bp, Bp)
    fout_scr[pl.ds(row_f, Bp), 0:H] = h[:, 0:H]
    fout_scr[pl.ds(row_b, Bp), H:H2] = h[:, H:H2]
    return h

  # TODO(synk): for production T (>~16), switch to a partial unroll (unroll=4).
  h_cat = lax.fori_loop(0, T, step,
                        jnp.zeros((Bp, H2), jnp.float32), unroll=True)

  # ---- word attention over the T axis ---------------------------------------
  f_all = fout_scr[...]                                            # (T*Bp, 2H)
  u = jnp.tanh(
      jnp.dot(f_all, ww_ref[...], preferred_element_type=jnp.float32)
      + wb_ref[...])                                               # (T*Bp, 2H)
  # u @ cw as VPU multiply + cross-lane reduce (no 1-lane-wide MXU pass).
  u3 = u.reshape(T, Bp, H2)        # splits the sublane dim by Bp=8: aligned
  s3 = jnp.tanh(jnp.sum(u3 * cw_ref[...], axis=-1, keepdims=True))  # (T, Bp, 1)

  m = jnp.max(s3, axis=0, keepdims=True)
  e = jnp.exp(s3 - m)
  attn = e / jnp.sum(e, axis=0, keepdims=True)    # exact division (T values)

  f3 = f_all.reshape(T, Bp, H2)
  ctx = jnp.sum(f3 * attn, axis=0)                                 # (Bp, 2H)

  # ---- classifier head (lane-dense padded output) ----------------------------
  out_ref[...] = (
      jnp.dot(ctx, fcw_ref[...], preferred_element_type=jnp.float32)
      + fcb_ref[...])
  hout_ref[...] = h_cat


# -----------------------------------------------------------------------------
# Wrapper: parameter fusion / padding + embedding gather stay in plain JAX
# -----------------------------------------------------------------------------
def _build_gru_blocks(p, H, E, GW):
  """Block/interleaved GRU weights with gate-lane layout
     [r_f | r_b | z_f | z_b | n_f | n_b | zero-pad]."""
  zEH = jnp.zeros((E, H), jnp.float32)
  zHH = jnp.zeros((H, H), jnp.float32)
  wi_f, wi_b = p["wi_f"], p["wi_b"]
  wh_f, wh_b = p["wh_f"], p["wh_b"]
  bi_f, bi_b, bh_f, bh_b = p["bi_f"], p["bi_b"], p["bh_f"], p["bh_b"]

  # input-side block: rows 0:E = x_t (feeds fwd gates), rows E:2E = x_{T-1-t}
  w_top = jnp.concatenate([wi_f[0], zEH, wi_f[1], zEH, wi_f[2], zEH], axis=1)
  w_bot = jnp.concatenate([zEH, wi_b[0], zEH, wi_b[1], zEH, wi_b[2]], axis=1)
  w_aug = jnp.pad(jnp.concatenate([w_top, w_bot], axis=0),
                  ((0, 0), (0, GW - 6 * H)))                       # (2E, GW)

  # recurrent block-diagonal: rows 0:H = hf, rows H:2H = hb
  h_top = jnp.concatenate([wh_f[0], zHH, wh_f[1], zHH, wh_f[2], zHH], axis=1)
  h_bot = jnp.concatenate([zHH, wh_b[0], zHH, wh_b[1], zHH, wh_b[2]], axis=1)
  wh_blk = jnp.pad(jnp.concatenate([h_top, h_bot], axis=0),
                   ((0, 0), (0, GW - 6 * H)))                      # (2H, GW)

  # r/z biases pre-summed (bi+bh); n keeps only bi (bh_n stays separate).
  bin_cat = jnp.pad(jnp.concatenate(
      [bi_f[0] + bh_f[0], bi_b[0] + bh_b[0],
       bi_f[1] + bh_f[1], bi_b[1] + bh_b[1],
       bi_f[2],           bi_b[2]], axis=1),
      ((0, 0), (0, GW - 6 * H)))                                   # (1, GW)
  bhn_cat = jnp.concatenate([bh_f[2], bh_b[2]], axis=1)            # (1, 2H)
  return w_aug, wh_blk, bin_cat, bhn_cat


def hier_att_net_forward(ids, params):
  """ids: (B, T) int32 token ids. Returns (logits (B, C), hidden (2, B, H))."""
  emb = params["embedding"]
  B, T = ids.shape
  E = emb.shape[1]
  H = params["wh_f"].shape[2]
  C = params["fcw"].shape[1]
  Bp = _round_up(max(B, 8), 8)          # fill sublanes
  GW = _round_up(6 * H, 128)            # fused gate lanes (both directions)
  CP = _round_up(max(C, 128), 128)      # lane-dense logits

  # input.permute(1, 0) + embedding lookup (gather stays in XLA); pad batch to
  # sublane width; build augmented input [x_t | x_{T-1-t}] so fwd+bwd
  # projections come out of ONE in-kernel matmul.
  x_tb = jnp.take(emb, ids.T, axis=0).astype(jnp.float32)          # (T, B, E)
  x_tb = jnp.pad(x_tb, ((0, 0), (0, Bp - B), (0, 0)))              # (T, Bp, E)
  x_aug = jnp.concatenate([x_tb, x_tb[::-1]], axis=-1).reshape(T * Bp, 2 * E)

  w_aug, wh_blk, bin_cat, bhn_cat = _build_gru_blocks(params, H, E, GW)
  ww = params["ww"]
  wb = params["wb"]
  cw_row = params["cw"].T                                          # (1, 2H)
  fcw = jnp.pad(params["fcw"], ((0, 0), (0, CP - C)))
  fcb = jnp.pad(params["fcb"], ((0, 0), (0, CP - C)))

  # TODO(synk): on v6e/v7x, cast x_aug and the weight blocks to bf16 here (MXU
  # operands only; keep f32 activations) — kept f32 for exact reference parity.
  # TODO(synk): for production sizes (B~128, T~50), tile the batch via a
  # parallel grid axis (uses v7x's 2nd TensorCore) and set vmem_limit_bytes.

  flops = int(2 * T * Bp * 2 * E * GW            # hoisted input projections
              + 2 * T * Bp * 2 * H * GW          # recurrent block-diag matmul
              + 2 * T * Bp * 2 * H * 2 * H       # attention u projection
              + 2 * T * Bp * 2 * H               # attention scores reduce
              + 2 * Bp * 2 * H * CP)             # classifier
  transcendentals = int(T * Bp * (3 * 2 * H + 2 * H + 2))
  n_elems = (x_aug.size + w_aug.size + wh_blk.size + bin_cat.size
             + bhn_cat.size + ww.size + wb.size + cw_row.size + fcw.size
             + fcb.size + Bp * CP + Bp * 2 * H)
  cost = pl.CostEstimate(flops=flops, transcendentals=transcendentals,
                         bytes_accessed=int(4 * n_elems))

  vmem = pl.BlockSpec(memory_space=pltpu.MemorySpace.VMEM)
  out_pad, hcat = pl.pallas_call(
      _han_word_att_kernel,
      out_shape=(
          jax.ShapeDtypeStruct((Bp, CP), jnp.float32),
          jax.ShapeDtypeStruct((Bp, 2 * H), jnp.float32),
      ),
      in_specs=[vmem] * 10,
      out_specs=(vmem, vmem),
      scratch_shapes=[
          pltpu.VMEM((T * Bp, GW), jnp.float32),     # hoisted input proj
          pltpu.VMEM((T * Bp, 2 * H), jnp.float32),  # bi-GRU outputs
      ],
      cost_estimate=cost,
  )(x_aug, w_aug, wh_blk, bin_cat, bhn_cat, ww, wb, cw_row, fcw, fcb)

  logits = out_pad[:B, :C]
  # TODO(synk): PyTorch carries word_hidden_state across calls on the module;
  # here the new hidden is returned explicitly (zero-initialized per call).
  h_out = jnp.stack([hcat[:B, :H], hcat[:B, H:2 * H]], axis=0)     # (2, B, H)
  return logits, h_out


# -----------------------------------------------------------------------------
# Pure-JAX reference (mirrors PyTorch nn.GRU + HAN attention) for verification
# -----------------------------------------------------------------------------
def reference_forward(ids, p):
  x = jnp.take(p["embedding"], ids.T, axis=0).astype(jnp.float32)  # (T,B,E)
  T, B, _ = x.shape
  H = p["wh_f"].shape[2]

  def cell(x_t, h, wi, wh, bi, bh):
    i_r, i_z, i_n = (x_t @ wi[0] + bi[0], x_t @ wi[1] + bi[1], x_t @ wi[2] + bi[2])
    h_r, h_z, h_n = (h @ wh[0] + bh[0], h @ wh[1] + bh[1], h @ wh[2] + bh[2])
    r = jax.nn.sigmoid(i_r + h_r)
    z = jax.nn.sigmoid(i_z + h_z)
    n = jnp.tanh(i_n + r * h_n)
    return (1.0 - z) * n + z * h

  hf = jnp.zeros((B, H), jnp.float32)
  hb = jnp.zeros((B, H), jnp.float32)
  f_list = [None] * T
  b_list = [None] * T
  for t in range(T):
    hf = cell(x[t], hf, p["wi_f"], p["wh_f"], p["bi_f"], p["bh_f"])
    f_list[t] = hf
    tb = T - 1 - t
    hb = cell(x[tb], hb, p["wi_b"], p["wh_b"], p["bi_b"], p["bh_b"])
    b_list[tb] = hb
  f_out = jnp.concatenate([jnp.stack(f_list), jnp.stack(b_list)], axis=-1)
  u = jnp.tanh(f_out @ p["ww"] + p["wb"])
  s = jnp.tanh(u @ p["cw"])[..., 0]
  attn = jax.nn.softmax(s, axis=0)
  ctx = jnp.sum(f_out * attn[..., None], axis=0)
  logits = ctx @ p["fcw"] + p["fcb"]
  return logits, jnp.stack([hf, hb])


# -----------------------------------------------------------------------------
# Deterministic parameter init (synthetic; no checkpoint loading)
# -----------------------------------------------------------------------------
def init_params(key, vocab, embed, hidden, num_classes):
  ks = jax.random.split(key, 16)
  s = 1.0 / np.sqrt(hidden)

  def u(k, shape):
    return jax.random.uniform(k, shape, jnp.float32, -s, s)

  return {
      "embedding": jax.random.normal(ks[0], (vocab, embed), jnp.float32) * 0.1,
      "wi_f": u(ks[1], (3, embed, hidden)),
      "wh_f": u(ks[2], (3, hidden, hidden)),
      "bi_f": u(ks[3], (3, 1, hidden)),
      "bh_f": u(ks[4], (3, 1, hidden)),
      "wi_b": u(ks[5], (3, embed, hidden)),
      "wh_b": u(ks[6], (3, hidden, hidden)),
      "bi_b": u(ks[7], (3, 1, hidden)),
      "bh_b": u(ks[8], (3, 1, hidden)),
      "ww": u(ks[9], (2 * hidden, 2 * hidden)),
      "wb": u(ks[10], (1, 2 * hidden)),
      "cw": u(ks[11], (2 * hidden, 1)),
      "fcw": u(ks[12], (2 * hidden, num_classes)),
      "fcb": u(ks[13], (1, num_classes)),
  }


if __name__ == "__main__":
  B = 2                 # batch_size
  T = 8                 # max_word_length
  H = 32                # word_hidden_size
  E = 32                # word2vec embedding dim
  V = 64                # vocab size
  C = 8                 # num_classes

  key = jax.random.PRNGKey(0)
  k_param, k_ids = jax.random.split(key)
  params = init_params(k_param, V, E, H, C)
  ids = jax.random.randint(k_ids, (B, T), 0, V, dtype=jnp.int32)

  logits, h_out = jax.jit(hier_att_net_forward)(ids, params)
  jax.block_until_ready(logits)

  ref_logits, ref_h = reference_forward(ids, params)
  np.testing.assert_allclose(np.asarray(logits), np.asarray(ref_logits),
                             rtol=2e-3, atol=1e-3)
  np.testing.assert_allclose(np.asarray(h_out), np.asarray(ref_h),
                             rtol=1e-3, atol=1e-4)

  print("KERNEL_OK")
</pallas_src>

<mosaic_0001>
module attributes {stable_mosaic.version = 11 : i64} {
  func.func @_han_word_att_kernel(%arg0: memref<64x64xf32, #tpu.memory_space<vmem>>, %arg1: memref<64x256xf32, #tpu.memory_space<vmem>>, %arg2: memref<64x256xf32, #tpu.memory_space<vmem>>, %arg3: memref<1x256xf32, #tpu.memory_space<vmem>>, %arg4: memref<1x64xf32, #tpu.memory_space<vmem>>, %arg5: memref<64x64xf32, #tpu.memory_space<vmem>>, %arg6: memref<1x64xf32, #tpu.memory_space<vmem>>, %arg7: memref<1x64xf32, #tpu.memory_space<vmem>>, %arg8: memref<64x128xf32, #tpu.memory_space<vmem>>, %arg9: memref<1x128xf32, #tpu.memory_space<vmem>>, %arg10: memref<8x128xf32, #tpu.memory_space<vmem>>, %arg11: memref<8x64xf32, #tpu.memory_space<vmem>>, %arg12: memref<64x256xf32, #tpu.memory_space<vmem>>, %arg13: memref<64x64xf32, #tpu.memory_space<vmem>>) attributes {dimension_semantics = [], scalar_prefetch = 0 : i64, scratch_operands = 2 : i64, tpu.core_type = #tpu.core_type<tc>} {
    %c0 = arith.constant 0 : index
    %c0_0 = arith.constant 0 : index
    %0 = vector.load %arg0[%c0, %c0_0] : memref<64x64xf32, #tpu.memory_space<vmem>>, vector<64x64xf32>
    %c0_1 = arith.constant 0 : index
    %c0_2 = arith.constant 0 : index
    %1 = vector.load %arg1[%c0_1, %c0_2] : memref<64x256xf32, #tpu.memory_space<vmem>>, vector<64x256xf32>
    %cst = arith.constant dense<0.000000e+00> : vector<64x256xf32>
    %2 = tpu.matmul %0, %1, %cst {dimension_numbers = #tpu.dot_dimension_numbers<[1], [0], [0], [1], [0, 0, 1, 1], [], []>} : vector<64x64xf32>, vector<64x256xf32>, vector<64x256xf32> -> vector<64x256xf32>
    %c0_3 = arith.constant 0 : index
    %c0_4 = arith.constant 0 : index
    %3 = vector.load %arg3[%c0_3, %c0_4] : memref<1x256xf32, #tpu.memory_space<vmem>>, vector<1x256xf32>
    %4 = vector.broadcast %3 : vector<1x256xf32> to vector<64x256xf32>
    %5 = arith.addf %2, %4 : vector<64x256xf32>
    %c0_5 = arith.constant 0 : index
    %c0_6 = arith.constant 0 : index
    %6 = vector.load %arg12[%c0_5, %c0_6] : memref<64x256xf32, #tpu.memory_space<vmem>>, vector<64x256xf32>
    tpu.vector_store %arg12[%c0_5, %c0_6], %5 {strides = array<i32>} : memref<64x256xf32, #tpu.memory_space<vmem>>, vector<64x256xf32>,
    %c0_7 = arith.constant 0 : index
    %c0_8 = arith.constant 0 : index
    %7 = vector.load %arg2[%c0_7, %c0_8] : memref<64x256xf32, #tpu.memory_space<vmem>>, vector<64x256xf32>
    %c0_9 = arith.constant 0 : index
    %c0_10 = arith.constant 0 : index
    %8 = vector.load %arg4[%c0_9, %c0_10] : memref<1x64xf32, #tpu.memory_space<vmem>>, vector<1x64xf32>
    %cst_11 = arith.constant 0.000000e+00 : f32
    %9 = vector.broadcast %cst_11 : f32 to vector<8x64xf32>
    %c0_i32 = arith.constant 0 : i32
    %c8_i32 = arith.constant 8 : i32
    %10 = arith.muli %c0_i32, %c8_i32 : i32
    %11 = tpu.assume_multiple %10, 8 : i32
    %12 = arith.index_cast %11 : i32 to index
    %c0_12 = arith.constant 0 : index
    %13 = vector.load %arg12[%12, %c0_12] : memref<64x256xf32, #tpu.memory_space<vmem>>, vector<8x256xf32>
    %cst_13 = arith.constant dense<0.000000e+00> : vector<8x256xf32>
    %14 = tpu.matmul %9, %7, %cst_13 {dimension_numbers = #tpu.dot_dimension_numbers<[1], [0], [0], [1], [0, 0, 1, 1], [], []>} : vector<8x64xf32>, vector<64x256xf32>, vector<8x256xf32> -> vector<8x256xf32>
    %15 = vector.extract_strided_slice %13 {offsets = [0, 0], sizes = [8, 64], strides = [1, 1]} : vector<8x256xf32> to vector<8x64xf32>
    %16 = vector.extract_strided_slice %14 {offsets = [0, 0], sizes = [8, 64], strides = [1, 1]} : vector<8x256xf32> to vector<8x64xf32>
    %17 = arith.addf %15, %16 : vector<8x64xf32>
    %18 = arith.negf %17 : vector<8x64xf32>
    %19 = math.exp %18 : vector<8x64xf32>
    %cst_14 = arith.constant 1.000000e+00 : f32
    %20 = vector.broadcast %cst_14 : f32 to vector<8x64xf32>
    %21 = arith.addf %20, %19 : vector<8x64xf32>
    %22 = arith.divf %20, %21 : vector<8x64xf32>
    %23 = vector.extract_strided_slice %13 {offsets = [0, 64], sizes = [8, 64], strides = [1, 1]} : vector<8x256xf32> to vector<8x64xf32>
    %24 = vector.extract_strided_slice %14 {offsets = [0, 64], sizes = [8, 64], strides = [1, 1]} : vector<8x256xf32> to vector<8x64xf32>
    %25 = arith.addf %23, %24 : vector<8x64xf32>
    %26 = arith.negf %25 : vector<8x64xf32>
    %27 = math.exp %26 : vector<8x64xf32>
    %cst_15 = arith.constant 1.000000e+00 : f32
    %28 = vector.broadcast %cst_15 : f32 to vector<8x64xf32>
    %29 = arith.addf %28, %27 : vector<8x64xf32>
    %30 = arith.divf %28, %29 : vector<8x64xf32>
    %31 = vector.extract_strided_slice %13 {offsets = [0, 128], sizes = [8, 64], strides = [1, 1]} : vector<8x256xf32> to vector<8x64xf32>
    %32 = vector.extract_strided_slice %14 {offsets = [0, 128], sizes = [8, 64], strides = [1, 1]} : vector<8x256xf32> to vector<8x64xf32>
    %33 = vector.broadcast %8 : vector<1x64xf32> to vector<8x64xf32>
    %34 = arith.addf %32, %33 : vector<8x64xf32>
    %35 = arith.mulf %22, %34 : vector<8x64xf32>
    %36 = arith.addf %31, %35 : vector<8x64xf32>
    %37 = math.tanh %36 : vector<8x64xf32>
    %cst_16 = arith.constant 1.000000e+00 : f32
    %38 = vector.broadcast %cst_16 : f32 to vector<8x64xf32>
    %39 = arith.subf %38, %30 : vector<8x64xf32>
    %40 = arith.mulf %39, %37 : vector<8x64xf32>
    %41 = arith.mulf %30, %9 : vector<8x64xf32>
    %42 = arith.addf %40, %41 : vector<8x64xf32>
    %c7_i32 = arith.constant 7 : i32
    %43 = arith.subi %c7_i32, %c0_i32 : i32
    %c8_i32_17 = arith.constant 8 : i32
    %44 = arith.muli %43, %c8_i32_17 : i32
    %45 = tpu.assume_multiple %44, 8 : i32
    %46 = vector.extract_strided_slice %42 {offsets = [0, 0], sizes = [8, 32], strides = [1, 1]} : vector<8x64xf32> to vector<8x32xf32>
    %47 = arith.index_cast %11 : i32 to index
    %c0_18 = arith.constant 0 : index
    %48 = vector.load %arg13[%47, %c0_18] : memref<64x64xf32, #tpu.memory_space<vmem>>, vector<8x32xf32>
    tpu.vector_store %arg13[%47, %c0_18], %46 {strides = array<i32>} : memref<64x64xf32, #tpu.memory_space<vmem>>, vector<8x32xf32>,
    %49 = vector.extract_strided_slice %42 {offsets = [0, 32], sizes = [8, 32], strides = [1, 1]} : vector<8x64xf32> to vector<8x32xf32>
    %50 = arith.index_cast %45 : i32 to index
    %c32 = arith.constant 32 : index
    %51 = vector.load %arg13[%50, %c32] : memref<64x64xf32, #tpu.memory_space<vmem>>, vector<8x32xf32>
    tpu.vector_store %arg13[%50, %c32], %49 {strides = array<i32>} : memref<64x64xf32, #tpu.memory_space<vmem>>, vector<8x32xf32>,
    %c1_i32 = arith.constant 1 : i32
    %c8_i32_19 = arith.constant 8 : i32
    %52 = arith.muli %c1_i32, %c8_i32_19 : i32
    %53 = tpu.assume_multiple %52, 8 : i32
    %54 = arith.index_cast %53 : i32 to index
    %c0_20 = arith.constant 0 : index
    %55 = vector.load %arg12[%54, %c0_20] : memref<64x256xf32, #tpu.memory_space<vmem>>, vector<8x256xf32>
    %cst_21 = arith.constant dense<0.000000e+00> : vector<8x256xf32>
    %56 = tpu.matmul %42, %7, %cst_21 {dimension_numbers = #tpu.dot_dimension_numbers<[1], [0], [0], [1], [0, 0, 1, 1], [], []>} : vector<8x64xf32>, vector<64x256xf32>, vector<8x256xf32> -> vector<8x256xf32>
    %57 = vector.extract_strided_slice %55 {offsets = [0, 0], sizes = [8, 64], strides = [1, 1]} : vector<8x256xf32> to vector<8x64xf32>
    %58 = vector.extract_strided_slice %56 {offsets = [0, 0], sizes = [8, 64], strides = [1, 1]} : vector<8x256xf32> to vector<8x64xf32>
    %59 = arith.addf %57, %58 : vector<8x64xf32>
    %60 = arith.negf %59 : vector<8x64xf32>
    %61 = math.exp %60 : vector<8x64xf32>
    %cst_22 = arith.constant 1.000000e+00 : f32
    %62 = vector.broadcast %cst_22 : f32 to vector<8x64xf32>
    %63 = arith.addf %62, %61 : vector<8x64xf32>
    %64 = arith.divf %62, %63 : vector<8x64xf32>
    %65 = vector.extract_strided_slice %55 {offsets = [0, 64], sizes = [8, 64], strides = [1, 1]} : vector<8x256xf32> to vector<8x64xf32>
    %66 = vector.extract_strided_slice %56 {offsets = [0, 64], sizes = [8, 64], strides = [1, 1]} : vector<8x256xf32> to vector<8x64xf32>
    %67 = arith.addf %65, %66 : vector<8x64xf32>
    %68 = arith.negf %67 : vector<8x64xf32>
    %69 = math.exp %68 : vector<8x64xf32>
    %cst_23 = arith.constant 1.000000e+00 : f32
    %70 = vector.broadcast %cst_23 : f32 to vector<8x64xf32>
    %71 = arith.addf %70, %69 : vector<8x64xf32>
    %72 = arith.divf %70, %71 : vector<8x64xf32>
    %73 = vector.extract_strided_slice %55 {offsets = [0, 128], sizes = [8, 64], strides = [1, 1]} : vector<8x256xf32> to vector<8x64xf32>
    %74 = vector.extract_strided_slice %56 {offsets = [0, 128], sizes = [8, 64], strides = [1, 1]} : vector<8x256xf32> to vector<8x64xf32>
    %75 = vector.broadcast %8 : vector<1x64xf32> to vector<8x64xf32>
    %76 = arith.addf %74, %75 : vector<8x64xf32>
    %77 = arith.mulf %64, %76 : vector<8x64xf32>
    %78 = arith.addf %73, %77 : vector<8x64xf32>
    %79 = math.tanh %78 : vector<8x64xf32>
    %cst_24 = arith.constant 1.000000e+00 : f32
    %80 = vector.broadcast %cst_24 : f32 to vector<8x64xf32>
    %81 = arith.subf %80, %72 : vector<8x64xf32>
    %82 = arith.mulf %81, %79 : vector<8x64xf32>
    %83 = arith.mulf %72, %42 : vector<8x64xf32>
    %84 = arith.addf %82, %83 : vector<8x64xf32>
    %c7_i32_25 = arith.constant 7 : i32
    %85 = arith.subi %c7_i32_25, %c1_i32 : i32
    %c8_i32_26 = arith.constant 8 : i32
    %86 = arith.muli %85, %c8_i32_26 : i32
    %87 = tpu.assume_multiple %86, 8 : i32
    %88 = vector.extract_strided_slice %84 {offsets = [0, 0], sizes = [8, 32], strides = [1, 1]} : vector<8x64xf32> to vector<8x32xf32>
    %89 = arith.index_cast %53 : i32 to index
    %c0_27 = arith.constant 0 : index
    %90 = vector.load %arg13[%89, %c0_27] : memref<64x64xf32, #tpu.memory_space<vmem>>, vector<8x32xf32>
    tpu.vector_store %arg13[%89, %c0_27], %88 {strides = array<i32>} : memref<64x64xf32, #tpu.memory_space<vmem>>, vector<8x32xf32>,
    %91 = vector.extract_strided_slice %84 {offsets = [0, 32], sizes = [8, 32], strides = [1, 1]} : vector<8x64xf32> to vector<8x32xf32>
    %92 = arith.index_cast %87 : i32 to index
    %c32_28 = arith.constant 32 : index
    %93 = vector.load %arg13[%92, %c32_28] : memref<64x64xf32, #tpu.memory_space<vmem>>, vector<8x32xf32>
    tpu.vector_store %arg13[%92, %c32_28], %91 {strides = array<i32>} : memref<64x64xf32, #tpu.memory_space<vmem>>, vector<8x32xf32>,
    %c2_i32 = arith.constant 2 : i32
    %c8_i32_29 = arith.constant 8 : i32
    %94 = arith.muli %c2_i32, %c8_i32_29 : i32
    %95 = tpu.assume_multiple %94, 8 : i32
    %96 = arith.index_cast %95 : i32 to index
    %c0_30 = arith.constant 0 : index
    %97 = vector.load %arg12[%96, %c0_30] : memref<64x256xf32, #tpu.memory_space<vmem>>, vector<8x256xf32>
    %cst_31 = arith.constant dense<0.000000e+00> : vector<8x256xf32>
    %98 = tpu.matmul %84, %7, %cst_31 {dimension_numbers = #tpu.dot_dimension_numbers<[1], [0], [0], [1], [0, 0, 1, 1], [], []>} : vector<8x64xf32>, vector<64x256xf32>, vector<8x256xf32> -> vector<8x256xf32>
    %99 = vector.extract_strided_slice %97 {offsets = [0, 0], sizes = [8, 64], strides = [1, 1]} : vector<8x256xf32> to vector<8x64xf32>
    %100 = vector.extract_strided_slice %98 {offsets = [0, 0], sizes = [8, 64], strides = [1, 1]} : vector<8x256xf32> to vector<8x64xf32>
    %101 = arith.addf %99, %100 : vector<8x64xf32>
    %102 = arith.negf %101 : vector<8x64xf32>
    %103 = math.exp %102 : vector<8x64xf32>
    %cst_32 = arith.constant 1.000000e+00 : f32
    %104 = vector.broadcast %cst_32 : f32 to vector<8x64xf32>
    %105 = arith.addf %104, %103 : vector<8x64xf32>
    %106 = arith.divf %104, %105 : vector<8x64xf32>
    %107 = vector.extract_strided_slice %97 {offsets = [0, 64], sizes = [8, 64], strides = [1, 1]} : vector<8x256xf32> to vector<8x64xf32>
    %108 = vector.extract_strided_slice %98 {offsets = [0, 64], sizes = [8, 64], strides = [1, 1]} : vector<8x256xf32> to vector<8x64xf32>
    %109 = arith.addf %107, %108 : vector<8x64xf32>
    %110 = arith.negf %109 : vector<8x64xf32>
    %111 = math.exp %110 : vector<8x64xf32>
    %cst_33 = arith.constant 1.000000e+00 : f32
    %112 = vector.broadcast %cst_33 : f32 to vector<8x64xf32>
    %113 = arith.addf %112, %111 : vector<8x64xf32>
    %114 = arith.divf %112, %113 : vector<8x64xf32>
    %115 = vector.extract_strided_slice %97 {offsets = [0, 128], sizes = [8, 64], strides = [1, 1]} : vector<8x256xf32> to vector<8x64xf32>
    %116 = vector.extract_strided_slice %98 {offsets = [0, 128], sizes = [8, 64], strides = [1, 1]} : vector<8x256xf32> to vector<8x64xf32>
    %117 = vector.broadcast %8 : vector<1x64xf32> to vector<8x64xf32>
    %118 = arith.addf %116, %117 : vector<8x64xf32>
    %119 = arith.mulf %106, %118 : vector<8x64xf32>
    %120 = arith.addf %115, %119 : vector<8x64xf32>
    %121 = math.tanh %120 : vector<8x64xf32>
    %cst_34 = arith.constant 1.000000e+00 : f32
    %122 = vector.broadcast %cst_34 : f32 to vector<8x64xf32>
    %123 = arith.subf %122, %114 : vector<8x64xf32>
    %124 = arith.mulf %123, %121 : vector<8x64xf32>
    %125 = arith.mulf %114, %84 : vector<8x64xf32>
    %126 = arith.addf %124, %125 : vector<8x64xf32>
    %c7_i32_35 = arith.constant 7 : i32
    %127 = arith.subi %c7_i32_35, %c2_i32 : i32
    %c8_i32_36 = arith.constant 8 : i32
    %128 = arith.muli %127, %c8_i32_36 : i32
    %129 = tpu.assume_multiple %128, 8 : i32
    %130 = vector.extract_strided_slice %126 {offsets = [0, 0], sizes = [8, 32], strides = [1, 1]} : vector<8x64xf32> to vector<8x32xf32>
    %131 = arith.index_cast %95 : i32 to index
    %c0_37 = arith.constant 0 : index
    %132 = vector.load %arg13[%131, %c0_37] : memref<64x64xf32, #tpu.memory_space<vmem>>, vector<8x32xf32>
    tpu.vector_store %arg13[%131, %c0_37], %130 {strides = array<i32>} : memref<64x64xf32, #tpu.memory_space<vmem>>, vector<8x32xf32>,
    %133 = vector.extract_strided_slice %126 {offsets = [0, 32], sizes = [8, 32], strides = [1, 1]} : vector<8x64xf32> to vector<8x32xf32>
    %134 = arith.index_cast %129 : i32 to index
    %c32_38 = arith.constant 32 : index
    %135 = vector.load %arg13[%134, %c32_38] : memref<64x64xf32, #tpu.memory_space<vmem>>, vector<8x32xf32>
    tpu.vector_store %arg13[%134, %c32_38], %133 {strides = array<i32>} : memref<64x64xf32, #tpu.memory_space<vmem>>, vector<8x32xf32>,
    %c3_i32 = arith.constant 3 : i32
    %c8_i32_39 = arith.constant 8 : i32
    %136 = arith.muli %c3_i32, %c8_i32_39 : i32
    %137 = tpu.assume_multiple %136, 8 : i32
    %138 = arith.index_cast %137 : i32 to index
    %c0_40 = arith.constant 0 : index
    %139 = vector.load %arg12[%138, %c0_40] : memref<64x256xf32, #tpu.memory_space<vmem>>, vector<8x256xf32>
    %cst_41 = arith.constant dense<0.000000e+00> : vector<8x256xf32>
    %140 = tpu.matmul %126, %7, %cst_41 {dimension_numbers = #tpu.dot_dimension_numbers<[1], [0], [0], [1], [0, 0, 1, 1], [], []>} : vector<8x64xf32>, vector<64x256xf32>, vector<8x256xf32> -> vector<8x256xf32>
    %141 = vector.extract_strided_slice %139 {offsets = [0, 0], sizes = [8, 64], strides = [1, 1]} : vector<8x256xf32> to vector<8x64xf32>
    %142 = vector.extract_strided_slice %140 {offsets = [0, 0], sizes = [8, 64], strides = [1, 1]} : vector<8x256xf32> to vector<8x64xf32>
    %143 = arith.addf %141, %142 : vector<8x64xf32>
    %144 = arith.negf %143 : vector<8x64xf32>
    %145 = math.exp %144 : vector<8x64xf32>
    %cst_42 = arith.constant 1.000000e+00 : f32
    %146 = vector.broadcast %cst_42 : f32 to vector<8x64xf32>
    %147 = arith.addf %146, %145 : vector<8x64xf32>
    %148 = arith.divf %146, %147 : vector<8x64xf32>
    %149 = vector.extract_strided_slice %139 {offsets = [0, 64], sizes = [8, 64], strides = [1, 1]} : vector<8x256xf32> to vector<8x64xf32>
    %150 = vector.extract_strided_slice %140 {offsets = [0, 64], sizes = [8, 64], strides = [1, 1]} : vector<8x256xf32> to vector<8x64xf32>
    %151 = arith.addf %149, %150 : vector<8x64xf32>
    %152 = arith.negf %151 : vector<8x64xf32>
    %153 = math.exp %152 : vector<8x64xf32>
    %cst_43 = arith.constant 1.000000e+00 : f32
    %154 = vector.broadcast %cst_43 : f32 to vector<8x64xf32>
    %155 = arith.addf %154, %153 : vector<8x64xf32>
    %156 = arith.divf %154, %155 : vector<8x64xf32>
    %157 = vector.extract_strided_slice %139 {offsets = [0, 128], sizes = [8, 64], strides = [1, 1]} : vector<8x256xf32> to vector<8x64xf32>
    %158 = vector.extract_strided_slice %140 {offsets = [0, 128], sizes = [8, 64], strides = [1, 1]} : vector<8x256xf32> to vector<8x64xf32>
    %159 = vector.broadcast %8 : vector<1x64xf32> to vector<8x64xf32>
    %160 = arith.addf %158, %159 : vector<8x64xf32>
    %161 = arith.mulf %148, %160 : vector<8x64xf32>
    %162 = arith.addf %157, %161 : vector<8x64xf32>
    %163 = math.tanh %162 : vector<8x64xf32>
    %cst_44 = arith.constant 1.000000e+00 : f32
    %164 = vector.broadcast %cst_44 : f32 to vector<8x64xf32>
    %165 = arith.subf %164, %156 : vector<8x64xf32>
    %166 = arith.mulf %165, %163 : vector<8x64xf32>
    %167 = arith.mulf %156, %126 : vector<8x64xf32>
    %168 = arith.addf %166, %167 : vector<8x64xf32>
    %c7_i32_45 = arith.constant 7 : i32
    %169 = arith.subi %c7_i32_45, %c3_i32 : i32
    %c8_i32_46 = arith.constant 8 : i32
    %170 = arith.muli %169, %c8_i32_46 : i32
    %171 = tpu.assume_multiple %170, 8 : i32
    %172 = vector.extract_strided_slice %168 {offsets = [0, 0], sizes = [8, 32], strides = [1, 1]} : vector<8x64xf32> to vector<8x32xf32>
    %173 = arith.index_cast %137 : i32 to index
    %c0_47 = arith.constant 0 : index
    %174 = vector.load %arg13[%173, %c0_47] : memref<64x64xf32, #tpu.memory_space<vmem>>, vector<8x32xf32>
    tpu.vector_store %arg13[%173, %c0_47], %172 {strides = array<i32>} : memref<64x64xf32, #tpu.memory_space<vmem>>, vector<8x32xf32>,
    %175 = vector.extract_strided_slice %168 {offsets = [0, 32], sizes = [8, 32], strides = [1, 1]} : vector<8x64xf32> to vector<8x32xf32>
    %176 = arith.index_cast %171 : i32 to index
    %c32_48 = arith.constant 32 : index
    %177 = vector.load %arg13[%176, %c32_48] : memref<64x64xf32, #tpu.memory_space<vmem>>, vector<8x32xf32>
    tpu.vector_store %arg13[%176, %c32_48], %175 {strides = array<i32>} : memref<64x64xf32, #tpu.memory_space<vmem>>, vector<8x32xf32>,
    %c4_i32 = arith.constant 4 : i32
    %c8_i32_49 = arith.constant 8 : i32
    %178 = arith.muli %c4_i32, %c8_i32_49 : i32
    %179 = tpu.assume_multiple %178, 8 : i32
    %180 = arith.index_cast %179 : i32 to index
    %c0_50 = arith.constant 0 : index
    %181 = vector.load %arg12[%180, %c0_50] : memref<64x256xf32, #tpu.memory_space<vmem>>, vector<8x256xf32>
    %cst_51 = arith.constant dense<0.000000e+00> : vector<8x256xf32>
    %182 = tpu.matmul %168, %7, %cst_51 {dimension_numbers = #tpu.dot_dimension_numbers<[1], [0], [0], [1], [0, 0, 1, 1], [], []>} : vector<8x64xf32>, vector<64x256xf32>, vector<8x256xf32> -> vector<8x256xf32>
    %183 = vector.extract_strided_slice %181 {offsets = [0, 0], sizes = [8, 64], strides = [1, 1]} : vector<8x256xf32> to vector<8x64xf32>
    %184 = vector.extract_strided_slice %182 {offsets = [0, 0], sizes = [8, 64], strides = [1, 1]} : vector<8x256xf32> to vector<8x64xf32>
    %185 = arith.addf %183, %184 : vector<8x64xf32>
    %186 = arith.negf %185 : vector<8x64xf32>
    %187 = math.exp %186 : vector<8x64xf32>
    %cst_52 = arith.constant 1.000000e+00 : f32
    %188 = vector.broadcast %cst_52 : f32 to vector<8x64xf32>
    %189 = arith.addf %188, %187 : vector<8x64xf32>
    %190 = arith.divf %188, %189 : vector<8x64xf32>
    %191 = vector.extract_strided_slice %181 {offsets = [0, 64], sizes = [8, 64], strides = [1, 1]} : vector<8x256xf32> to vector<8x64xf32>
    %192 = vector.extract_strided_slice %182 {offsets = [0, 64], sizes = [8, 64], strides = [1, 1]} : vector<8x256xf32> to vector<8x64xf32>
    %193 = arith.addf %191, %192 : vector<8x64xf32>
    %194 = arith.negf %193 : vector<8x64xf32>
    %195 = math.exp %194 : vector<8x64xf32>
    %cst_53 = arith.constant 1.000000e+00 : f32
    %196 = vector.broadcast %cst_53 : f32 to vector<8x64xf32>
    %197 = arith.addf %196, %195 : vector<8x64xf32>
    %198 = arith.divf %196, %197 : vector<8x64xf32>
    %199 = vector.extract_strided_slice %181 {offsets = [0, 128], sizes = [8, 64], strides = [1, 1]} : vector<8x256xf32> to vector<8x64xf32>
    %200 = vector.extract_strided_slice %182 {offsets = [0, 128], sizes = [8, 64], strides = [1, 1]} : vector<8x256xf32> to vector<8x64xf32>
    %201 = vector.broadcast %8 : vector<1x64xf32> to vector<8x64xf32>
    %202 = arith.addf %200, %201 : vector<8x64xf32>
    %203 = arith.mulf %190, %202 : vector<8x64xf32>
    %204 = arith.addf %199, %203 : vector<8x64xf32>
    %205 = math.tanh %204 : vector<8x64xf32>
    %cst_54 = arith.constant 1.000000e+00 : f32
    %206 = vector.broadcast %cst_54 : f32 to vector<8x64xf32>
    %207 = arith.subf %206, %198 : vector<8x64xf32>
    %208 = arith.mulf %207, %205 : vector<8x64xf32>
    %209 = arith.mulf %198, %168 : vector<8x64xf32>
    %210 = arith.addf %208, %209 : vector<8x64xf32>
    %c7_i32_55 = arith.constant 7 : i32
    %211 = arith.subi %c7_i32_55, %c4_i32 : i32
    %c8_i32_56 = arith.constant 8 : i32
    %212 = arith.muli %211, %c8_i32_56 : i32
    %213 = tpu.assume_multiple %212, 8 : i32
    %214 = vector.extract_strided_slice %210 {offsets = [0, 0], sizes = [8, 32], strides = [1, 1]} : vector<8x64xf32> to vector<8x32xf32>
    %215 = arith.index_cast %179 : i32 to index
    %c0_57 = arith.constant 0 : index
    %216 = vector.load %arg13[%215, %c0_57] : memref<64x64xf32, #tpu.memory_space<vmem>>, vector<8x32xf32>
    tpu.vector_store %arg13[%215, %c0_57], %214 {strides = array<i32>} : memref<64x64xf32, #tpu.memory_space<vmem>>, vector<8x32xf32>,
    %217 = vector.extract_strided_slice %210 {offsets = [0, 32], sizes = [8, 32], strides = [1, 1]} : vector<8x64xf32> to vector<8x32xf32>
    %218 = arith.index_cast %213 : i32 to index
    %c32_58 = arith.constant 32 : index
    %219 = vector.load %arg13[%218, %c32_58] : memref<64x64xf32, #tpu.memory_space<vmem>>, vector<8x32xf32>
    tpu.vector_store %arg13[%218, %c32_58], %217 {strides = array<i32>} : memref<64x64xf32, #tpu.memory_space<vmem>>, vector<8x32xf32>,
    %c5_i32 = arith.constant 5 : i32
    %c8_i32_59 = arith.constant 8 : i32
    %220 = arith.muli %c5_i32, %c8_i32_59 : i32
    %221 = tpu.assume_multiple %220, 8 : i32
    %222 = arith.index_cast %221 : i32 to index
    %c0_60 = arith.constant 0 : index
    %223 = vector.load %arg12[%222, %c0_60] : memref<64x256xf32, #tpu.memory_space<vmem>>, vector<8x256xf32>
    %cst_61 = arith.constant dense<0.000000e+00> : vector<8x256xf32>
    %224 = tpu.matmul %210, %7, %cst_61 {dimension_numbers = #tpu.dot_dimension_numbers<[1], [0], [0], [1], [0, 0, 1, 1], [], []>} : vector<8x64xf32>, vector<64x256xf32>, vector<8x256xf32> -> vector<8x256xf32>
    %225 = vector.extract_strided_slice %223 {offsets = [0, 0], sizes = [8, 64], strides = [1, 1]} : vector<8x256xf32> to vector<8x64xf32>
    %226 = vector.extract_strided_slice %224 {offsets = [0, 0], sizes = [8, 64], strides = [1, 1]} : vector<8x256xf32> to vector<8x64xf32>
    %227 = arith.addf %225, %226 : vector<8x64xf32>
    %228 = arith.negf %227 : vector<8x64xf32>
    %229 = math.exp %228 : vector<8x64xf32>
    %cst_62 = arith.constant 1.000000e+00 : f32
    %230 = vector.broadcast %cst_62 : f32 to vector<8x64xf32>
    %231 = arith.addf %230, %229 : vector<8x64xf32>
    %232 = arith.divf %230, %231 : vector<8x64xf32>
    %233 = vector.extract_strided_slice %223 {offsets = [0, 64], sizes = [8, 64], strides = [1, 1]} : vector<8x256xf32> to vector<8x64xf32>
    %234 = vector.extract_strided_slice %224 {offsets = [0, 64], sizes = [8, 64], strides = [1, 1]} : vector<8x256xf32> to vector<8x64xf32>
    %235 = arith.addf %233, %234 : vector<8x64xf32>
    %236 = arith.negf %235 : vector<8x64xf32>
    %237 = math.exp %236 : vector<8x64xf32>
    %cst_63 = arith.constant 1.000000e+00 : f32
    %238 = vector.broadcast %cst_63 : f32 to vector<8x64xf32>
    %239 = arith.addf %238, %237 : vector<8x64xf32>
    %240 = arith.divf %238, %239 : vector<8x64xf32>
    %241 = vector.extract_strided_slice %223 {offsets = [0, 128], sizes = [8, 64], strides = [1, 1]} : vector<8x256xf32> to vector<8x64xf32>
    %242 = vector.extract_strided_slice %224 {offsets = [0, 128], sizes = [8, 64], strides = [1, 1]} : vector<8x256xf32> to vector<8x64xf32>
    %243 = vector.broadcast %8 : vector<1x64xf32> to vector<8x64xf32>
    %244 = arith.addf %242, %243 : vector<8x64xf32>
    %245 = arith.mulf %232, %244 : vector<8x64xf32>
    %246 = arith.addf %241, %245 : vector<8x64xf32>
    %247 = math.tanh %246 : vector<8x64xf32>
    %cst_64 = arith.constant 1.000000e+00 : f32
    %248 = vector.broadcast %cst_64 : f32 to vector<8x64xf32>
    %249 = arith.subf %248, %240 : vector<8x64xf32>
    %250 = arith.mulf %249, %247 : vector<8x64xf32>
    %251 = arith.mulf %240, %210 : vector<8x64xf32>
    %252 = arith.addf %250, %251 : vector<8x64xf32>
    %c7_i32_65 = arith.constant 7 : i32
    %253 = arith.subi %c7_i32_65, %c5_i32 : i32
    %c8_i32_66 = arith.constant 8 : i32
    %254 = arith.muli %253, %c8_i32_66 : i32
    %255 = tpu.assume_multiple %254, 8 : i32
    %256 = vector.extract_strided_slice %252 {offsets = [0, 0], sizes = [8, 32], strides = [1, 1]} : vector<8x64xf32> to vector<8x32xf32>
    %257 = arith.index_cast %221 : i32 to index
    %c0_67 = arith.constant 0 : index
    %258 = vector.load %arg13[%257, %c0_67] : memref<64x64xf32, #tpu.memory_space<vmem>>, vector<8x32xf32>
    tpu.vector_store %arg13[%257, %c0_67], %256 {strides = array<i32>} : memref<64x64xf32, #tpu.memory_space<vmem>>, vector<8x32xf32>,
    %259 = vector.extract_strided_slice %252 {offsets = [0, 32], sizes = [8, 32], strides = [1, 1]} : vector<8x64xf32> to vector<8x32xf32>
    %260 = arith.index_cast %255 : i32 to index
    %c32_68 = arith.constant 32 : index
    %261 = vector.load %arg13[%260, %c32_68] : memref<64x64xf32, #tpu.memory_space<vmem>>, vector<8x32xf32>
    tpu.vector_store %arg13[%260, %c32_68], %259 {strides = array<i32>} : memref<64x64xf32, #tpu.memory_space<vmem>>, vector<8x32xf32>,
    %c6_i32 = arith.constant 6 : i32
    %c8_i32_69 = arith.constant 8 : i32
    %262 = arith.muli %c6_i32, %c8_i32_69 : i32
    %263 = tpu.assume_multiple %262, 8 : i32
    %264 = arith.index_cast %263 : i32 to index
    %c0_70 = arith.constant 0 : index
    %265 = vector.load %arg12[%264, %c0_70] : memref<64x256xf32, #tpu.memory_space<vmem>>, vector<8x256xf32>
    %cst_71 = arith.constant dense<0.000000e+00> : vector<8x256xf32>
    %266 = tpu.matmul %252, %7, %cst_71 {dimension_numbers = #tpu.dot_dimension_numbers<[1], [0], [0], [1], [0, 0, 1, 1], [], []>} : vector<8x64xf32>, vector<64x256xf32>, vector<8x256xf32> -> vector<8x256xf32>
    %267 = vector.extract_strided_slice %265 {offsets = [0, 0], sizes = [8, 64], strides = [1, 1]} : vector<8x256xf32> to vector<8x64xf32>
    %268 = vector.extract_strided_slice %266 {offsets = [0, 0], sizes = [8, 64], strides = [1, 1]} : vector<8x256xf32> to vector<8x64xf32>
    %269 = arith.addf %267, %268 : vector<8x64xf32>
    %270 = arith.negf %269 : vector<8x64xf32>
    %271 = math.exp %270 : vector<8x64xf32>
    %cst_72 = arith.constant 1.000000e+00 : f32
    %272 = vector.broadcast %cst_72 : f32 to vector<8x64xf32>
    %273 = arith.addf %272, %271 : vector<8x64xf32>
    %274 = arith.divf %272, %273 : vector<8x64xf32>
    %275 = vector.extract_strided_slice %265 {offsets = [0, 64], sizes = [8, 64], strides = [1, 1]} : vector<8x256xf32> to vector<8x64xf32>
    %276 = vector.extract_strided_slice %266 {offsets = [0, 64], sizes = [8, 64], strides = [1, 1]} : vector<8x256xf32> to vector<8x64xf32>
    %277 = arith.addf %275, %276 : vector<8x64xf32>
    %278 = arith.negf %277 : vector<8x64xf32>
    %279 = math.exp %278 : vector<8x64xf32>
    %cst_73 = arith.constant 1.000000e+00 : f32
    %280 = vector.broadcast %cst_73 : f32 to vector<8x64xf32>
    %281 = arith.addf %280, %279 : vector<8x64xf32>
    %282 = arith.divf %280, %281 : vector<8x64xf32>
    %283 = vector.extract_strided_slice %265 {offsets = [0, 128], sizes = [8, 64], strides = [1, 1]} : vector<8x256xf32> to vector<8x64xf32>
    %284 = vector.extract_strided_slice %266 {offsets = [0, 128], sizes = [8, 64], strides = [1, 1]} : vector<8x256xf32> to vector<8x64xf32>
    %285 = vector.broadcast %8 : vector<1x64xf32> to vector<8x64xf32>
    %286 = arith.addf %284, %285 : vector<8x64xf32>
    %287 = arith.mulf %274, %286 : vector<8x64xf32>
    %288 = arith.addf %283, %287 : vector<8x64xf32>
    %289 = math.tanh %288 : vector<8x64xf32>
    %cst_74 = arith.constant 1.000000e+00 : f32
    %290 = vector.broadcast %cst_74 : f32 to vector<8x64xf32>
    %291 = arith.subf %290, %282 : vector<8x64xf32>
    %292 = arith.mulf %291, %289 : vector<8x64xf32>
    %293 = arith.mulf %282, %252 : vector<8x64xf32>
    %294 = arith.addf %292, %293 : vector<8x64xf32>
    %c7_i32_75 = arith.constant 7 : i32
    %295 = arith.subi %c7_i32_75, %c6_i32 : i32
    %c8_i32_76 = arith.constant 8 : i32
    %296 = arith.muli %295, %c8_i32_76 : i32
    %297 = tpu.assume_multiple %296, 8 : i32
    %298 = vector.extract_strided_slice %294 {offsets = [0, 0], sizes = [8, 32], strides = [1, 1]} : vector<8x64xf32> to vector<8x32xf32>
    %299 = arith.index_cast %263 : i32 to index
    %c0_77 = arith.constant 0 : index
    %300 = vector.load %arg13[%299, %c0_77] : memref<64x64xf32, #tpu.memory_space<vmem>>, vector<8x32xf32>
    tpu.vector_store %arg13[%299, %c0_77], %298 {strides = array<i32>} : memref<64x64xf32, #tpu.memory_space<vmem>>, vector<8x32xf32>,
    %301 = vector.extract_strided_slice %294 {offsets = [0, 32], sizes = [8, 32], strides = [1, 1]} : vector<8x64xf32> to vector<8x32xf32>
    %302 = arith.index_cast %297 : i32 to index
    %c32_78 = arith.constant 32 : index
    %303 = vector.load %arg13[%302, %c32_78] : memref<64x64xf32, #tpu.memory_space<vmem>>, vector<8x32xf32>
    tpu.vector_store %arg13[%302, %c32_78], %301 {strides = array<i32>} : memref<64x64xf32, #tpu.memory_space<vmem>>, vector<8x32xf32>,
    %c7_i32_79 = arith.constant 7 : i32
    %c8_i32_80 = arith.constant 8 : i32
    %304 = arith.muli %c7_i32_79, %c8_i32_80 : i32
    %305 = tpu.assume_multiple %304, 8 : i32
    %306 = arith.index_cast %305 : i32 to index
    %c0_81 = arith.constant 0 : index
    %307 = vector.load %arg12[%306, %c0_81] : memref<64x256xf32, #tpu.memory_space<vmem>>, vector<8x256xf32>
    %cst_82 = arith.constant dense<0.000000e+00> : vector<8x256xf32>
    %308 = tpu.matmul %294, %7, %cst_82 {dimension_numbers = #tpu.dot_dimension_numbers<[1], [0], [0], [1], [0, 0, 1, 1], [], []>} : vector<8x64xf32>, vector<64x256xf32>, vector<8x256xf32> -> vector<8x256xf32>
    %309 = vector.extract_strided_slice %307 {offsets = [0, 0], sizes = [8, 64], strides = [1, 1]} : vector<8x256xf32> to vector<8x64xf32>
    %310 = vector.extract_strided_slice %308 {offsets = [0, 0], sizes = [8, 64], strides = [1, 1]} : vector<8x256xf32> to vector<8x64xf32>
    %311 = arith.addf %309, %310 : vector<8x64xf32>
    %312 = arith.negf %311 : vector<8x64xf32>
    %313 = math.exp %312 : vector<8x64xf32>
    %cst_83 = arith.constant 1.000000e+00 : f32
    %314 = vector.broadcast %cst_83 : f32 to vector<8x64xf32>
    %315 = arith.addf %314, %313 : vector<8x64xf32>
    %316 = arith.divf %314, %315 : vector<8x64xf32>
    %317 = vector.extract_strided_slice %307 {offsets = [0, 64], sizes = [8, 64], strides = [1, 1]} : vector<8x256xf32> to vector<8x64xf32>
    %318 = vector.extract_strided_slice %308 {offsets = [0, 64], sizes = [8, 64], strides = [1, 1]} : vector<8x256xf32> to vector<8x64xf32>
    %319 = arith.addf %317, %318 : vector<8x64xf32>
    %320 = arith.negf %319 : vector<8x64xf32>
    %321 = math.exp %320 : vector<8x64xf32>
    %cst_84 = arith.constant 1.000000e+00 : f32
    %322 = vector.broadcast %cst_84 : f32 to vector<8x64xf32>
    %323 = arith.addf %322, %321 : vector<8x64xf32>
    %324 = arith.divf %322, %323 : vector<8x64xf32>
    %325 = vector.extract_strided_slice %307 {offsets = [0, 128], sizes = [8, 64], strides = [1, 1]} : vector<8x256xf32> to vector<8x64xf32>
    %326 = vector.extract_strided_slice %308 {offsets = [0, 128], sizes = [8, 64], strides = [1, 1]} : vector<8x256xf32> to vector<8x64xf32>
    %327 = vector.broadcast %8 : vector<1x64xf32> to vector<8x64xf32>
    %328 = arith.addf %326, %327 : vector<8x64xf32>
    %329 = arith.mulf %316, %328 : vector<8x64xf32>
    %330 = arith.addf %325, %329 : vector<8x64xf32>
    %331 = math.tanh %330 : vector<8x64xf32>
    %cst_85 = arith.constant 1.000000e+00 : f32
    %332 = vector.broadcast %cst_85 : f32 to vector<8x64xf32>
    %333 = arith.subf %332, %324 : vector<8x64xf32>
    %334 = arith.mulf %333, %331 : vector<8x64xf32>
    %335 = arith.mulf %324, %294 : vector<8x64xf32>
    %336 = arith.addf %334, %335 : vector<8x64xf32>
    %c7_i32_86 = arith.constant 7 : i32
    %337 = arith.subi %c7_i32_86, %c7_i32_79 : i32
    %c8_i32_87 = arith.constant 8 : i32
    %338 = arith.muli %337, %c8_i32_87 : i32
    %339 = tpu.assume_multiple %338, 8 : i32
    %340 = vector.extract_strided_slice %336 {offsets = [0, 0], sizes = [8, 32], strides = [1, 1]} : vector<8x64xf32> to vector<8x32xf32>
    %341 = arith.index_cast %305 : i32 to index
    %c0_88 = arith.constant 0 : index
    %342 = vector.load %arg13[%341, %c0_88] : memref<64x64xf32, #tpu.memory_space<vmem>>, vector<8x32xf32>
    tpu.vector_store %arg13[%341, %c0_88], %340 {strides = array<i32>} : memref<64x64xf32, #tpu.memory_space<vmem>>, vector<8x32xf32>,
    %343 = vector.extract_strided_slice %336 {offsets = [0, 32], sizes = [8, 32], strides = [1, 1]} : vector<8x64xf32> to vector<8x32xf32>
    %344 = arith.index_cast %339 : i32 to index
    %c32_89 = arith.constant 32 : index
    %345 = vector.load %arg13[%344, %c32_89] : memref<64x64xf32, #tpu.memory_space<vmem>>, vector<8x32xf32>
    tpu.vector_store %arg13[%344, %c32_89], %343 {strides = array<i32>} : memref<64x64xf32, #tpu.memory_space<vmem>>, vector<8x32xf32>,
    %c8_i32_90 = arith.constant 8 : i32
    %c0_91 = arith.constant 0 : index
    %c0_92 = arith.constant 0 : index
    %346 = vector.load %arg13[%c0_91, %c0_92] : memref<64x64xf32, #tpu.memory_space<vmem>>, vector<64x64xf32>
    %c0_93 = arith.constant 0 : index
    %c0_94 = arith.constant 0 : index
    %347 = vector.load %arg5[%c0_93, %c0_94] : memref<64x64xf32, #tpu.memory_space<vmem>>, vector<64x64xf32>
    %cst_95 = arith.constant dense<0.000000e+00> : vector<64x64xf32>
    %348 = tpu.matmul %346, %347, %cst_95 {dimension_numbers = #tpu.dot_dimension_numbers<[1], [0], [0], [1], [0, 0, 1, 1], [], []>} : vector<64x64xf32>, vector<64x64xf32>, vector<64x64xf32> -> vector<64x64xf32>
    %c0_96 = arith.constant 0 : index
    %c0_97 = arith.constant 0 : index
    %349 = vector.load %arg6[%c0_96, %c0_97] : memref<1x64xf32, #tpu.memory_space<vmem>>, vector<1x64xf32>
    %350 = vector.broadcast %349 : vector<1x64xf32> to vector<64x64xf32>
    %351 = arith.addf %348, %350 : vector<64x64xf32>
    %352 = math.tanh %351 : vector<64x64xf32>
    %353 = vector.shape_cast %352 : vector<64x64xf32> to vector<8x8x64xf32>
    %c0_98 = arith.constant 0 : index
    %c0_99 = arith.constant 0 : index
    %354 = vector.load %arg7[%c0_98, %c0_99] : memref<1x64xf32, #tpu.memory_space<vmem>>, vector<1x64xf32>
    %355 = vector.shape_cast %354 : vector<1x64xf32> to vector<1x1x64xf32>
    %356 = vector.broadcast %355 : vector<1x1x64xf32> to vector<8x8x64xf32>
    %357 = arith.mulf %353, %356 : vector<8x8x64xf32>
    %cst_100 = arith.constant dense<0.000000e+00> : vector<8x8xf32>
    %358 = vector.multi_reduction <add>, %357, %cst_100 [2] : vector<8x8x64xf32> to vector<8x8xf32>
    %359 = vector.shape_cast %358 : vector<8x8xf32> to vector<8x8x1xf32>
    %360 = math.tanh %359 : vector<8x8x1xf32>
    %cst_101 = arith.constant dense<0xFF800000> : vector<8x1xf32>
    %361 = vector.multi_reduction <maximumf>, %360, %cst_101 [0] : vector<8x8x1xf32> to vector<8x1xf32>
    %362 = vector.shape_cast %361 : vector<8x1xf32> to vector<1x8x1xf32>
    %363 = vector.broadcast %362 : vector<1x8x1xf32> to vector<8x8x1xf32>
    %364 = arith.subf %360, %363 : vector<8x8x1xf32>
    %365 = math.exp %364 : vector<8x8x1xf32>
    %cst_102 = arith.constant dense<0.000000e+00> : vector<8x1xf32>
    %366 = vector.multi_reduction <add>, %365, %cst_102 [0] : vector<8x8x1xf32> to vector<8x1xf32>
    %367 = vector.shape_cast %366 : vector<8x1xf32> to vector<1x8x1xf32>
    %368 = vector.broadcast %367 : vector<1x8x1xf32> to vector<8x8x1xf32>
    %369 = arith.divf %365, %368 : vector<8x8x1xf32>
    %370 = vector.shape_cast %346 : vector<64x64xf32> to vector<8x8x64xf32>
    %371 = vector.broadcast %369 : vector<8x8x1xf32> to vector<8x8x64xf32>
    %372 = arith.mulf %370, %371 : vector<8x8x64xf32>
    %cst_103 = arith.constant dense<0.000000e+00> : vector<8x64xf32>
    %373 = vector.multi_reduction <add>, %372, %cst_103 [0] : vector<8x8x64xf32> to vector<8x64xf32>
    %c0_104 = arith.constant 0 : index
    %c0_105 = arith.constant 0 : index
    %374 = vector.load %arg8[%c0_104, %c0_105] : memref<64x128xf32, #tpu.memory_space<vmem>>, vector<64x128xf32>
    %cst_106 = arith.constant dense<0.000000e+00> : vector<8x128xf32>
    %375 = tpu.matmul %373, %374, %cst_106 {dimension_numbers = #tpu.dot_dimension_numbers<[1], [0], [0], [1], [0, 0, 1, 1], [], []>} : vector<8x64xf32>, vector<64x128xf32>, vector<8x128xf32> -> vector<8x128xf32>
    %c0_107 = arith.constant 0 : index
    %c0_108 = arith.constant 0 : index
    %376 = vector.load %arg9[%c0_107, %c0_108] : memref<1x128xf32, #tpu.memory_space<vmem>>, vector<1x128xf32>
    %377 = vector.broadcast %376 : vector<1x128xf32> to vector<8x128xf32>
    %378 = arith.addf %375, %377 : vector<8x128xf32>
    %c0_109 = arith.constant 0 : index
    %c0_110 = arith.constant 0 : index
    %379 = vector.load %arg10[%c0_109, %c0_110] : memref<8x128xf32, #tpu.memory_space<vmem>>, vector<8x128xf32>
    tpu.vector_store %arg10[%c0_109, %c0_110], %378 {strides = array<i32>} : memref<8x128xf32, #tpu.memory_space<vmem>>, vector<8x128xf32>,
    %c0_111 = arith.constant 0 : index
    %c0_112 = arith.constant 0 : index
    %380 = vector.load %arg11[%c0_111, %c0_112] : memref<8x64xf32, #tpu.memory_space<vmem>>, vector<8x64xf32>
    tpu.vector_store %arg11[%c0_111, %c0_112], %336 {strides = array<i32>} : memref<8x64xf32, #tpu.memory_space<vmem>>, vector<8x64xf32>,
    return
  }
}

</mosaic_0001>

<bundles_post_ra>
// kernel: hier_att_net_forward.1
= control target key start
LH: loop header
LB: loop body
LE: loop exit
PB: predicated region body
PF: predicated region fallthrough
CT: control target
= control target key end

     0   :  { %v1675_v3 = vmov 0.0   ;;  %vm73_vm0 = vcmask 523264   ;;  %v63_v34 = vlaneseq  ;;  %vm352_vm1 = vcmask 261120   ;;  %s2279_s1 = inlined_call_operand.vmem [shape: f32[64,256], index: 1, kind: input, shape index: {}]   ;;  %s2280_s2 = inlined_call_operand.vmem [shape: f32[64,256], index: 2, kind: input, shape index: {}]   ;;  %s2281_s0 = inlined_call_operand.vmem [shape: f32[64,64], index: 0, kind: input, shape index: {}]   ;;  %s2282_s3 = inlined_call_operand.vmem [shape: f32[1,256], index: 3, kind: input, shape index: {}]   ;;  %s2283_s4 = inlined_call_operand.vmem [shape: f32[1,64], index: 4, kind: input, shape index: {}]   ;;  %s2284_s5 = inlined_call_operand.vmem [shape: f32[64,64], index: 5, kind: input, shape index: {}]   ;;  %s2285_s11 = inlined_call_operand.vmem [shape: f32[8,64], index: 11, kind: output, shape index: {1}]   ;;  %s2286_s6 = inlined_call_operand.vmem [shape: f32[1,64], index: 6, kind: input, shape index: {}]   ;;  %s2287_s7 = inlined_call_operand.vmem [shape: f32[1,64], index: 7, kind: input, shape index: {}]   ;;  %s2288_s8 = inlined_call_operand.vmem [shape: f32[64,128], index: 8, kind: input, shape index: {}]   ;;  %s2289_s9 = inlined_call_operand.vmem [shape: f32[1,128], index: 9, kind: input, shape index: {}]   ;;  %s2290_s10 = inlined_call_operand.vmem [shape: f32[8,128], index: 10, kind: output, shape index: {0}]  }
   0x1   :  { %v60_v0 = vld [vmem:[%s2279_s1 + $0x78] sm:$0xff]  ;;  %v59_v2 = vld [vmem:[%s2279_s1 + $0x70] sm:$0xff]  ;;  %162 = vmatprep.mubr.f32.mxu0 %v1675_v3  ;;  %316 = vmatprep.mubr.f32.mxu1 %v1675_v3  ;;  %v58_v5 = vld [vmem:[%s2279_s1 + $0x68] sm:$0xff]  ;;  %vm355_vm2 = vcmask 523520   ;;  %vm1677_vm3 = vmmov 0  }
   0x2   :  { %v1744_v1 = vld [vmem:[%s2280_s2 + $0x78] sm:$0xff]  ;;  %114 = vmatprep.subr.mxu0 %v60_v0  ;;  %v1755_v4 = vld [vmem:[%s2280_s2 + $0x70] sm:$0xff]  ;;  %v1763_v6 = vld [vmem:[%s2280_s2 + $0x68] sm:$0xff]  ;;  %v64_v35 = vshrl.u32 %v63_v34, 7 }
   0x3   :  { %268 = vmatprep.subr.mxu1 %v1744_v1  ;;  %115 = vmatpush1.msra.mxu0 %v59_v2  ;;  %v57_v7 = vld [vmem:[%s2279_s1 + $0x60] sm:$0xff]  ;;  %v56_v9 = vld [vmem:[%s2279_s1 + $0x58] sm:$0xff]  ;;  %v55_v11 = vld [vmem:[%s2279_s1 + $0x50] sm:$0xff] }
   0x4   :  { %269 = vmatpush1.msra.mxu1 %v1755_v4  ;;  %v1772_v8 = vld [vmem:[%s2280_s2 + $0x60] sm:$0xff]  ;;  %116 = vmatprep.subr.mxu0 %v58_v5  ;;  %v1781_v10 = vld [vmem:[%s2280_s2 + $0x58] sm:$0xff]  ;;  %v1789_v12 = vld [vmem:[%s2280_s2 + $0x50] sm:$0xff]  ;;  %v65_v36 = vsub.s32 0, %v64_v35  ;;  %v69_v46 = vsub.s32 1, %v64_v35 }
   0x5   :  { %270 = vmatprep.subr.mxu1 %v1763_v6  ;;  %117 = vmatpush1.msra.mxu0 %v57_v7  ;;  %v54_v13 = vld [vmem:[%s2279_s1 + $0x48] sm:$0xff]  ;;  %v53_v15 = vld [vmem:[%s2279_s1 + $0x40] sm:$0xff]  ;;  %v52_v17 = vld [vmem:[%s2279_s1 + $0x38] sm:$0xff] }
   0x6   :  { %271 = vmatpush1.msra.mxu1 %v1772_v8  ;;  %v1798_v14 = vld [vmem:[%s2280_s2 + $0x48] sm:$0xff]  ;;  %118 = vmatprep.subr.mxu0 %v56_v9  ;;  %v1807_v16 = vld [vmem:[%s2280_s2 + $0x40] sm:$0xff]  ;;  %v1816_v18 = vld [vmem:[%s2280_s2 + $0x38] sm:$0xff] }
   0x7   :  { %272 = vmatprep.subr.mxu1 %v1781_v10  ;;  %119 = vmatpush1.msra.mxu0 %v55_v11  ;;  %v51_v19 = vld [vmem:[%s2279_s1 + $0x30] sm:$0xff]  ;;  %v50_v21 = vld [vmem:[%s2279_s1 + $0x28] sm:$0xff]  ;;  %v49_v23 = vld [vmem:[%s2279_s1 + $0x20] sm:$0xff] }
   0x8   :  { %273 = vmatpush1.msra.mxu1 %v1789_v12  ;;  %120 = vmatprep.subr.mxu0 %v54_v13  ;;  %v1825_v20 = vld [vmem:[%s2280_s2 + $0x30] sm:$0xff]  ;;  %v1834_v22 = vld [vmem:[%s2280_s2 + $0x28] sm:$0xff]  ;;  %v1843_v24 = vld [vmem:[%s2280_s2 + $0x20] sm:$0xff] }
   0x9   :  { %274 = vmatprep.subr.mxu1 %v1798_v14  ;;  %121 = vmatpush1.msra.mxu0 %v53_v15  ;;  %v48_v25 = vld [vmem:[%s2279_s1 + $0x18] sm:$0xff]  ;;  %v47_v27 = vld [vmem:[%s2279_s1 + $0x10] sm:$0xff]  ;;  %v46_v29 = vld [vmem:[%s2279_s1 + $0x8] sm:$0xff] }
   0xa   :  { %275 = vmatpush1.msra.mxu1 %v1807_v16  ;;  %122 = vmatprep.subr.mxu0 %v52_v17  ;;  %v1852_v26 = vld [vmem:[%s2280_s2 + $0x18] sm:$0xff]  ;;  %v1861_v28 = vld [vmem:[%s2280_s2 + $0x10] sm:$0xff]  ;;  %v1870_v30 = vld [vmem:[%s2280_s2 + $0x8] sm:$0xff] }
   0xb   :  { %276 = vmatprep.subr.mxu1 %v1816_v18  ;;  %123 = vmatpush1.msra.mxu0 %v51_v19  ;;  %v45_v31 = vld [vmem:[%s2279_s1] sm:$0xff]  ;;  %v38_v56 = vld [vmem:[%s2281_s0 + $0x8] sm:$0xff] }
   0xc   :  { %277 = vmatpush1.msra.mxu1 %v1825_v20  ;;  %124 = vmatprep.subr.mxu0 %v50_v21  ;;  %v1879_v32 = vld [vmem:[%s2280_s2] sm:$0xff]  ;;  %v42_v35 = vld [vmem:[%s2281_s0 + $0x28] sm:$0xff] }
   0xd   :  { %278 = vmatprep.subr.mxu1 %v1834_v22  ;;  %125 = vmatpush1.msra.mxu0 %v49_v23  ;;  %v37_v33 = vld [vmem:[%s2281_s0] sm:$0xff] }
   0xe   :  { %279 = vmatpush1.msra.mxu1 %v1843_v24  ;;  %126 = vmatprep.subr.mxu0 %v48_v25  ;;  %v61_v37 = vld [vmem:[%s2282_s3] sm:$0x3] }
   0xf   :  { %280 = vmatprep.subr.mxu1 %v1852_v26  ;;  %127 = vmatpush1.msra.mxu0 %v47_v27  ;;  %v1928_v38 = vrot.slane %v61_v37, %v65_v36  ;;  %v1934_v47 = vld [vmem:[%s2283_s4] ss:$0 sm:$0xff]  ;;  %v1936_v49 = vrot.slane %v61_v37, %v69_v46  ;;  %s1676_s4 = smov 64   ;;  %v43_v36 = vld [vmem:[%s2281_s0 + $0x30] sm:$0xff]  ;;  %v44_v37 = vld [vmem:[%s2281_s0 + $0x38] sm:$0xff] }
  0x10   :  { %281 = vmatpush1.msra.mxu1 %v1861_v28  ;;  %128 = vmatprep.subr.mxu0 %v46_v29  ;;  %v39_v29 = vld [vmem:[%s2281_s0 + $0x10] sm:$0xff] }
  0x11   :  { %282 = vmatprep.subr.mxu1 %v1870_v30  ;;  %129 = vmatpush1.msra.mxu0 %v45_v31  ;;  %v40_v31 = vld [vmem:[%s2281_s0 + $0x18] sm:$0xff] }
  0x12   :  { %283 = vmatpush1.msra.mxu1 %v1879_v32  ;;  %1466 = vmatmul.mubr.msk.f32.vlgmr.msra.gmra.mxu0 %vm73_vm0, %v37_v33  ;;  %v41_v33 = vld [vmem:[%s2281_s0 + $0x20] sm:$0xff] }
  0x13   :  { %317 = vmatmul.mubr.f32.vlgmr.msra.gmra.mxu1 %v1675_v3  ;;  %380 = vmatprep.subr.mxu1 %v1744_v1 }
  0x14   :  { %168 = vmatprep.mubr.f32.mxu0 %v1675_v3  ;;  %381 = vmatpush1.msra.mxu1 %v1755_v4 }
  0x15   :  { %428 = vmatprep.mubr.f32.mxu1 %v1675_v3  ;;  %382 = vmatprep.subr.mxu1 %v1763_v6 }
  0x16   :  { %485 = vmatprep.subr.mxu0 %v1744_v1  ;;  %383 = vmatpush1.msra.mxu1 %v1772_v8 }
  0x17   :  { %486 = vmatpush1.msra.mxu0 %v1755_v4  ;;  %384 = vmatprep.subr.mxu1 %v1781_v10 }
  0x18   :  { %487 = vmatprep.subr.mxu0 %v1763_v6  ;;  %385 = vmatpush1.msra.mxu1 %v1789_v12 }
  0x19   :  { %488 = vmatpush1.msra.mxu0 %v1772_v8  ;;  %386 = vmatprep.subr.mxu1 %v1798_v14 }
  0x1a   :  { %489 = vmatprep.subr.mxu0 %v1781_v10  ;;  %387 = vmatpush1.msra.mxu1 %v1807_v16 }
  0x1b   :  { %490 = vmatpush1.msra.mxu0 %v1789_v12  ;;  %388 = vmatprep.subr.mxu1 %v1816_v18 }
  0x1c   :  { %491 = vmatprep.subr.mxu0 %v1798_v14  ;;  %389 = vmatpush1.msra.mxu1 %v1825_v20 }
  0x1d   :  { %492 = vmatpush1.msra.mxu0 %v1807_v16  ;;  %390 = vmatprep.subr.mxu1 %v1834_v22 }
  0x1e   :  { %493 = vmatprep.subr.mxu0 %v1816_v18  ;;  %391 = vmatpush1.msra.mxu1 %v1843_v24 }
  0x1f   :  { %494 = vmatpush1.msra.mxu0 %v1825_v20  ;;  %392 = vmatprep.subr.mxu1 %v1852_v26 }
  0x20   :  { %495 = vmatprep.subr.mxu0 %v1834_v22  ;;  %393 = vmatpush1.msra.mxu1 %v1861_v28 }
  0x21   :  { %496 = vmatpush1.msra.mxu0 %v1843_v24  ;;  %394 = vmatprep.subr.mxu1 %v1870_v30 }
  0x22   :  { %497 = vmatprep.subr.mxu0 %v1852_v26  ;;  %395 = vmatpush1.msra.mxu1 %v1879_v32 }
  0x23   :  { %498 = vmatpush1.msra.mxu0 %v1861_v28  ;;  %590 = vmatprep.subr.mxu1 %v1744_v1 }
  0x24   :  { %499 = vmatprep.subr.mxu0 %v1870_v30  ;;  %1467 = vmatmul.mubr.msk.f32.gmra.mxu0 %vm73_vm0, %v38_v56 }
  0x25   :  { %500 = vmatpush1.msra.mxu0 %v1879_v32  ;;  %174 = vmatprep.mubr.f32.mxu0 %v1675_v3 }
  0x26   :  { %695 = vmatprep.subr.mxu0 %v1744_v1 }
  0x28   :  { %1468 = vmatmul.mubr.msk.f32.gmra.mxu0 %vm73_vm0, %v39_v29 }
  0x29   :  { %180 = vmatprep.mubr.f32.mxu0 %v1675_v3 }
  0x2c   :  { %1469 = vmatmul.mubr.msk.f32.gmra.mxu0 %vm73_vm0, %v40_v31 }
  0x2d   :  { %186 = vmatprep.mubr.f32.mxu0 %v1675_v3 }
  0x30   :  { %1470 = vmatmul.mubr.msk.f32.gmra.mxu0 %vm73_vm0, %v41_v33 }
  0x31   :  { %192 = vmatprep.mubr.f32.mxu0 %v1675_v3 }
  0x34   :  { %1471 = vmatmul.mubr.msk.f32.gmra.mxu0 %vm73_vm0, %v42_v35 }
  0x35   :  { %198 = vmatprep.mubr.f32.mxu0 %v1675_v3 }
  0x38   :  { %1472 = vmatmul.mubr.msk.f32.gmra.mxu0 %vm73_vm0, %v43_v36 }
  0x39   :  { %204 = vmatprep.mubr.f32.mxu0 %v1675_v3 }
  0x3c   :  { %1473 = vmatmul.mubr.msk.f32.gmra.mxu0 %vm73_vm0, %v44_v37 }
  0x3d   :  { %533 = vmatprep.mubr.f32.mxu0 %v1675_v3 }
  0xd2   :  { %v164_v39 = vpop.f32.mrf.mxu0 }
  0xd3   :  { %v165_v40 = vadd.f32 %v164_v39, %v1928_v38  ;;  %v318_v41 = vpop.f32.mrf.mxu1 }
  0xd4   :  { %v166_v50 = vpop.f32.mrf.mxu0 }
  0xd5   :  { %v323_v42 = vadd.f32 %v318_v41, %v165_v40  ;;  %v320_v48 = vpop.f32.mrf.mxu1  ;;  %v167_v53 = vadd.f32 %v166_v50, %v1936_v49 }
  0xd6   :  { %v336_v51 = vadd.f32 %v1934_v47, %v320_v48 }
  0xd7   :  { %v1474_v43 = vmul.f32 -1.442695, %v323_v42 }
  0xd9   :  { %1577 = vpow2.f32 %v1474_v43 }
  0xe4   :  { %v170_v0 = vpop.f32.mrf.mxu0 }
  0xe5   :  { %v171_v2 = vadd.f32 %v170_v0, %v1928_v38 }
  0xe6   :  { %v1578_v44 = vpop.eup %1577  ;;  %v172_v17 = vpop.f32.mrf.mxu0 }
  0xe7   :  { %v327_v45 = vadd.f32 1.0, %v1578_v44  ;;  %v173_v23 = vadd.f32 %v172_v17, %v1936_v49 }
  0xe9   :  { %1579 = vrcp.f32 %v327_v45  ;;  %v176_v45 = vpop.f32.mrf.mxu0 }
  0xeb   :  { %v178_v46 = vpop.f32.mrf.mxu0 }
  0xed   :  { %v182_v48 = vpop.f32.mrf.mxu0 }
  0xee   :  { %v183_v29 = vadd.f32 %v182_v48, %v1928_v38 }
  0xef   :  { %v2026_v50 = vpop.f32.mrf.mxu0 }
  0xf6   :  { %v1580_v52 = vpop.eup %1579 }
  0xf7   :  { %v337_v54 = vmul.f32 %v1580_v52, %v336_v51  ;;  %v340_v58 = vsub.f32 1.0, %v1580_v52  ;;  %v346_v60 = vmul.f32 0.0, %v1580_v52  ;;  %v2028_v51 = vpop.f32.mrf.mxu0 }
  0xf9   :  { %v338_v55 = vadd.f32 %v337_v54, %v167_v53  ;;  %v2030_v52 = vpop.f32.mrf.mxu0 }
  0xfb   :  { %1581 = vtanh.f32 %v338_v55  ;;  %v2032_v53 = vpop.f32.mrf.mxu0 }
  0xfd   :  { %v2034_v54 = vpop.f32.mrf.mxu0 }
  0xff   :  { %v2036_v55 = vpop.f32.mrf.mxu0 }
 0x101   :  { %v2038_v56 = vpop.f32.mrf.mxu0 }
 0x108   :  { %v1582_v57 = vpop.eup %1581 }
 0x109   :  { %342 = vrot.lane.b32.xlu0 %v1582_v57, %s1676_s4  ;;  %v2040_v57 = vpop.f32.mrf.mxu0 }
 0x17b   :  { %v343_v59 = vpop.permute.xlu0 %342 }
 0x17c   :  { %v345_v61 = vmul.f32 %v343_v59, %v340_v58  ;;  %v2042_v58 = vpop.f32.mrf.mxu0  ;;  %v177_v59 = vadd.f32 %v176_v45, %v1928_v38 }
 0x17e   :  { %v1946_v62 = vadd.f32 %v346_v60, %v345_v61 }
 0x180   :  { %349 = vrot.lane.b32.xlu0 %v1946_v62, %s1676_s4 }
 0x1f2   :  { %v350_v63 = vpop.permute.xlu0 %349 }
 0x1f3   :  { %353 = vst.msk [vmem:[#allocation3] sm:$0xff] %vm352_vm1, %v350_v63  ;;  %1476 = vmatmul.mubr.msk.f32.vlgmr.msra.gmra.mxu1 %vm73_vm0, %v350_v63 }
 0x1f4   :  { %356 = vst.msk [vmem:[#allocation3 + $0x38] sm:$0xff] %vm355_vm2, %v350_v63  ;;  %591 = vmatpush1.msra.mxu1 %v1755_v4  ;;  %638 = vmatprep.mubr.f32.mxu1 %v1675_v3 }
 0x1f5   :  { %592 = vmatprep.subr.mxu1 %v1763_v6 }
 0x1f6   :  { %593 = vmatpush1.msra.mxu1 %v1772_v8 }
 0x1f7   :  { %594 = vmatprep.subr.mxu1 %v1781_v10 }
 0x1f8   :  { %595 = vmatpush1.msra.mxu1 %v1789_v12 }
 0x1f9   :  { %596 = vmatprep.subr.mxu1 %v1798_v14 }
 0x1fa   :  { %597 = vmatpush1.msra.mxu1 %v1807_v16 }
 0x1fb   :  { %598 = vmatprep.subr.mxu1 %v1816_v18 }
 0x1fc   :  { %599 = vmatpush1.msra.mxu1 %v1825_v20 }
 0x1fd   :  { %600 = vmatprep.subr.mxu1 %v1834_v22 }
 0x1fe   :  { %601 = vmatpush1.msra.mxu1 %v1843_v24 }
 0x1ff   :  { %602 = vmatprep.subr.mxu1 %v1852_v26 }
 0x200   :  { %603 = vmatpush1.msra.mxu1 %v1861_v28 }
 0x201   :  { %604 = vmatprep.subr.mxu1 %v1870_v30 }
 0x202   :  { %605 = vmatpush1.msra.mxu1 %v1879_v32 }
 0x203   :  { %798 = vmatprep.subr.mxu1 %v1744_v1 }
 0x2b3   :  { %v430_v5 = vpop.f32.mrf.mxu1 }
 0x2b4   :  { %v435_v7 = vadd.f32 %v430_v5, %v171_v2 }
 0x2b5   :  { %v432_v15 = vpop.f32.mrf.mxu1 }
 0x2b6   :  { %v1477_v9 = vmul.f32 -1.442695, %v435_v7  ;;  %v442_v19 = vadd.f32 %v1934_v47, %v432_v15 }
 0x2b8   :  { %1583 = vpow2.f32 %v1477_v9  ;;  %v179_v9 = vadd.f32 %v178_v46, %v1936_v49 }
 0x2c5   :  { %v1584_v11 = vpop.eup %1583 }
 0x2c6   :  { %v439_v13 = vadd.f32 1.0, %v1584_v11 }
 0x2c8   :  { %1585 = vrcp.f32 %v439_v13 }
 0x2d5   :  { %v1586_v21 = vpop.eup %1585 }
 0x2d6   :  { %v443_v25 = vmul.f32 %v1586_v21, %v442_v19  ;;  %v446_v39 = vsub.f32 1.0, %v1586_v21  ;;  %v452_v41 = vmul.f32 %v1586_v21, %v1946_v62 }
 0x2d8   :  { %v444_v27 = vadd.f32 %v443_v25, %v173_v23 }
 0x2da   :  { %1587 = vtanh.f32 %v444_v27 }
 0x2e7   :  { %v1588_v34 = vpop.eup %1587 }
 0x2e8   :  { %448 = vrot.lane.b32.xlu1 %v1588_v34, %s1676_s4 }
 0x35a   :  { %v449_v40 = vpop.permute.xlu1 %448 }
 0x35b   :  { %v451_v42 = vmul.f32 %v449_v40, %v446_v39 }
 0x35d   :  { %v453_v43 = vadd.f32 %v452_v41, %v451_v42  ;;  %v185_v41 = vadd.f32 %v2026_v50, %v1936_v49  ;;  %v189_v50 = vadd.f32 %v2028_v51, %v1928_v38 }
 0x35f   :  { %455 = vrot.lane.b32.xlu1 %v453_v43, %s1676_s4 }
 0x3d1   :  { %v456_v44 = vpop.permute.xlu1 %455 }
 0x3d2   :  { %459 = vst.msk [vmem:[#allocation3 + $0x8] sm:$0xff] %vm352_vm1, %v456_v44  ;;  %1478 = vmatmul.mubr.msk.f32.vlgmr.msra.gmra.mxu0 %vm73_vm0, %v456_v44 }
 0x3d3   :  { %461 = vst.msk [vmem:[#allocation3 + $0x30] sm:$0xff] %vm355_vm2, %v456_v44  ;;  %696 = vmatpush1.msra.mxu0 %v1755_v4  ;;  %743 = vmatprep.mubr.f32.mxu0 %v1675_v3 }
 0x3d4   :  { %697 = vmatprep.subr.mxu0 %v1763_v6 }
 0x3d5   :  { %698 = vmatpush1.msra.mxu0 %v1772_v8 }
 0x3d6   :  { %699 = vmatprep.subr.mxu0 %v1781_v10 }
 0x3d7   :  { %700 = vmatpush1.msra.mxu0 %v1789_v12 }
 0x3d8   :  { %701 = vmatprep.subr.mxu0 %v1798_v14 }
 0x3d9   :  { %702 = vmatpush1.msra.mxu0 %v1807_v16 }
 0x3da   :  { %703 = vmatprep.subr.mxu0 %v1816_v18 }
 0x3db   :  { %704 = vmatpush1.msra.mxu0 %v1825_v20 }
 0x3dc   :  { %705 = vmatprep.subr.mxu0 %v1834_v22 }
 0x3dd   :  { %706 = vmatpush1.msra.mxu0 %v1843_v24 }
 0x3de   :  { %707 = vmatprep.subr.mxu0 %v1852_v26 }
 0x3df   :  { %708 = vmatpush1.msra.mxu0 %v1861_v28 }
 0x3e0   :  { %709 = vmatprep.subr.mxu0 %v1870_v30 }
 0x3e1   :  { %710 = vmatpush1.msra.mxu0 %v1879_v32 }
 0x3e2   :  { %901 = vmatprep.subr.mxu0 %v1744_v1 }
 0x492   :  { %v535_v60 = vpop.f32.mrf.mxu0 }
 0x493   :  { %v540_v61 = vadd.f32 %v535_v60, %v177_v59 }
 0x494   :  { %v537_v2 = vpop.f32.mrf.mxu0 }
 0x495   :  { %v1479_v62 = vmul.f32 -1.442695, %v540_v61  ;;  %v547_v5 = vadd.f32 %v1934_v47, %v537_v2 }
 0x497   :  { %1589 = vpow2.f32 %v1479_v62 }
 0x4a4   :  { %v1590_v63 = vpop.eup %1589 }
 0x4a5   :  { %v544_v0 = vadd.f32 1.0, %v1590_v63 }
 0x4a7   :  { %1591 = vrcp.f32 %v544_v0 }
 0x4b4   :  { %v1592_v7 = vpop.eup %1591 }
 0x4b5   :  { %v548_v11 = vmul.f32 %v1592_v7, %v547_v5  ;;  %v551_v17 = vsub.f32 1.0, %v1592_v7  ;;  %v557_v21 = vmul.f32 %v1592_v7, %v453_v43 }
 0x4b7   :  { %v549_v13 = vadd.f32 %v548_v11, %v179_v9  ;;  %v191_v11 = vadd.f32 %v2030_v52, %v1936_v49 }
 0x4b9   :  { %1593 = vtanh.f32 %v549_v13 }
 0x4c6   :  { %v1594_v15 = vpop.eup %1593 }
 0x4c7   :  { %553 = vrot.lane.b32.xlu0 %v1594_v15, %s1676_s4 }
 0x539   :  { %v554_v19 = vpop.permute.xlu0 %553 }
 0x53a   :  { %v556_v23 = vmul.f32 %v554_v19, %v551_v17 }
 0x53c   :  { %v558_v25 = vadd.f32 %v557_v21, %v556_v23 }
 0x53e   :  { %560 = vrot.lane.b32.xlu1 %v558_v25, %s1676_s4 }
 0x5b0   :  { %v561_v27 = vpop.permute.xlu1 %560 }
 0x5b1   :  { %564 = vst.msk [vmem:[#allocation3 + $0x10] sm:$0xff] %vm352_vm1, %v561_v27  ;;  %1480 = vmatmul.mubr.msk.f32.vlgmr.msra.gmra.mxu1 %vm73_vm0, %v561_v27 }
 0x5b2   :  { %566 = vst.msk [vmem:[#allocation3 + $0x28] sm:$0xff] %vm355_vm2, %v561_v27  ;;  %799 = vmatpush1.msra.mxu1 %v1755_v4  ;;  %846 = vmatprep.mubr.f32.mxu1 %v1675_v3 }
 0x5b3   :  { %800 = vmatprep.subr.mxu1 %v1763_v6 }
 0x5b4   :  { %801 = vmatpush1.msra.mxu1 %v1772_v8 }
 0x5b5   :  { %802 = vmatprep.subr.mxu1 %v1781_v10 }
 0x5b6   :  { %803 = vmatpush1.msra.mxu1 %v1789_v12 }
 0x5b7   :  { %804 = vmatprep.subr.mxu1 %v1798_v14 }
 0x5b8   :  { %805 = vmatpush1.msra.mxu1 %v1807_v16 }
 0x5b9   :  { %806 = vmatprep.subr.mxu1 %v1816_v18 }
 0x5ba   :  { %807 = vmatpush1.msra.mxu1 %v1825_v20 }
 0x5bb   :  { %808 = vmatprep.subr.mxu1 %v1834_v22 }
 0x5bc   :  { %809 = vmatpush1.msra.mxu1 %v1843_v24 }
 0x5bd   :  { %810 = vmatprep.subr.mxu1 %v1852_v26 }
 0x5be   :  { %811 = vmatpush1.msra.mxu1 %v1861_v28 }
 0x5bf   :  { %812 = vmatprep.subr.mxu1 %v1870_v30 }
 0x5c0   :  { %813 = vmatpush1.msra.mxu1 %v1879_v32 }
 0x5c1   :  { %1004 = vmatprep.subr.mxu1 %v1744_v1 }
 0x671   :  { %v640_v31 = vpop.f32.mrf.mxu1 }
 0x672   :  { %v645_v33 = vadd.f32 %v640_v31, %v183_v29 }
 0x673   :  { %v642_v37 = vpop.f32.mrf.mxu1 }
 0x674   :  { %v1481_v34 = vmul.f32 -1.442695, %v645_v33  ;;  %v652_v39 = vadd.f32 %v1934_v47, %v642_v37 }
 0x676   :  { %1595 = vpow2.f32 %v1481_v34 }
 0x683   :  { %v1596_v35 = vpop.eup %1595 }
 0x684   :  { %v649_v36 = vadd.f32 1.0, %v1596_v35 }
 0x686   :  { %1597 = vrcp.f32 %v649_v36 }
 0x693   :  { %v1598_v40 = vpop.eup %1597 }
 0x694   :  { %v653_v42 = vmul.f32 %v1598_v40, %v652_v39  ;;  %v656_v44 = vsub.f32 1.0, %v1598_v40  ;;  %v662_v46 = vmul.f32 %v1598_v40, %v558_v25 }
 0x696   :  { %v654_v43 = vadd.f32 %v653_v42, %v185_v41  ;;  %v203_v42 = vadd.f32 %v2038_v56, %v1936_v49  ;;  %v207_v56 = vadd.f32 %v2040_v57, %v1928_v38  ;;  %v1098_v57 = vld [vmem:[%s2284_s5 + $0x30] sm:$0xff] }
 0x698   :  { %1599 = vtanh.f32 %v654_v43 }
 0x6a5   :  { %v1600_v1 = vpop.eup %1599 }
 0x6a6   :  { %658 = vrot.lane.b32.xlu0 %v1600_v1, %s1676_s4 }
 0x718   :  { %v659_v45 = vpop.permute.xlu0 %658 }
 0x719   :  { %v661_v48 = vmul.f32 %v659_v45, %v656_v44 }
 0x71b   :  { %v663_v59 = vadd.f32 %v662_v46, %v661_v48 }
 0x71d   :  { %665 = vrot.lane.b32.xlu1 %v663_v59, %s1676_s4 }
 0x78f   :  { %v666_v60 = vpop.permute.xlu1 %665 }
 0x790   :  { %669 = vst.msk [vmem:[#allocation3 + $0x18] sm:$0xff] %vm352_vm1, %v666_v60  ;;  %1482 = vmatmul.mubr.msk.f32.vlgmr.msra.gmra.mxu0 %vm73_vm0, %v666_v60 }
 0x791   :  { %671 = vst.msk [vmem:[#allocation3 + $0x20] sm:$0xff] %vm355_vm2, %v666_v60  ;;  %902 = vmatpush1.msra.mxu0 %v1755_v4  ;;  %949 = vmatprep.mubr.f32.mxu0 %v1675_v3 }
 0x792   :  { %903 = vmatprep.subr.mxu0 %v1763_v6 }
 0x793   :  { %904 = vmatpush1.msra.mxu0 %v1772_v8 }
 0x794   :  { %905 = vmatprep.subr.mxu0 %v1781_v10 }
 0x795   :  { %906 = vmatpush1.msra.mxu0 %v1789_v12 }
 0x796   :  { %907 = vmatprep.subr.mxu0 %v1798_v14 }
 0x797   :  { %908 = vmatpush1.msra.mxu0 %v1807_v16 }
 0x798   :  { %909 = vmatprep.subr.mxu0 %v1816_v18 }
 0x799   :  { %910 = vmatpush1.msra.mxu0 %v1825_v20 }
 0x79a   :  { %911 = vmatprep.subr.mxu0 %v1834_v22 }
 0x79b   :  { %912 = vmatpush1.msra.mxu0 %v1843_v24 }
 0x79c   :  { %913 = vmatprep.subr.mxu0 %v1852_v26 }
 0x79d   :  { %914 = vmatpush1.msra.mxu0 %v1861_v28 }
 0x79e   :  { %915 = vmatprep.subr.mxu0 %v1870_v30 }
 0x79f   :  { %916 = vmatpush1.msra.mxu0 %v1879_v32 }
 0x850   :  { %v745_v61 = vpop.f32.mrf.mxu0 }
 0x851   :  { %v750_v62 = vadd.f32 %v745_v61, %v189_v50 }
 0x852   :  { %v747_v5 = vpop.f32.mrf.mxu0 }
 0x853   :  { %v1483_v63 = vmul.f32 -1.442695, %v750_v62  ;;  %v757_v7 = vadd.f32 %v1934_v47, %v747_v5 }
 0x855   :  { %1601 = vpow2.f32 %v1483_v63 }
 0x862   :  { %v1602_v0 = vpop.eup %1601 }
 0x863   :  { %v754_v2 = vadd.f32 1.0, %v1602_v0 }
 0x865   :  { %1603 = vrcp.f32 %v754_v2 }
 0x872   :  { %v1604_v9 = vpop.eup %1603 }
 0x873   :  { %v758_v13 = vmul.f32 %v1604_v9, %v757_v7  ;;  %v761_v51 = vsub.f32 1.0, %v1604_v9  ;;  %v767_v21 = vmul.f32 %v1604_v9, %v663_v59  ;;  %v209_v9 = vadd.f32 %v2042_v58, %v1936_v49 }
 0x875   :  { %v759_v15 = vadd.f32 %v758_v13, %v191_v11 }
 0x877   :  { %1605 = vtanh.f32 %v759_v15  ;;  %v1095_v15 = vld [vmem:[%s2284_s5 + $0x18] sm:$0xff] }
 0x884   :  { %v1606_v17 = vpop.eup %1605 }
 0x885   :  { %763 = vrot.lane.b32.xlu0 %v1606_v17, %s1676_s4  ;;  %v1094_v17 = vld [vmem:[%s2284_s5 + $0x10] sm:$0xff] }
 0x8f7   :  { %v764_v19 = vpop.permute.xlu0 %763 }
 0x8f8   :  { %v766_v23 = vmul.f32 %v764_v19, %v761_v51  ;;  %v1093_v51 = vld [vmem:[%s2284_s5 + $0x8] sm:$0xff]  ;;  %v1092_v19 = vld [vmem:[%s2284_s5] sm:$0xff] }
 0x8fa   :  { %v768_v25 = vadd.f32 %v767_v21, %v766_v23 }
 0x8fc   :  { %770 = vrot.lane.b32.xlu1 %v768_v25, %s1676_s4 }
 0x96e   :  { %v771_v27 = vpop.permute.xlu1 %770 }
 0x96f   :  { %773 = vst.msk [vmem:[#allocation3 + $0x20] sm:$0xff] %vm352_vm1, %v771_v27  ;;  %1484 = vmatmul.mubr.msk.f32.vlgmr.msra.gmra.mxu1 %vm73_vm0, %v771_v27 }
 0x970   :  { %774 = vst.msk [vmem:[#allocation3 + $0x18] sm:$0xff] %vm355_vm2, %v771_v27  ;;  %1005 = vmatpush1.msra.mxu1 %v1755_v4  ;;  %1052 = vmatprep.mubr.f32.mxu1 %v1675_v3  ;;  %v195_v4 = vadd.f32 %v2032_v53, %v1928_v38 }
 0x971   :  { %1006 = vmatprep.subr.mxu1 %v1763_v6 }
 0x972   :  { %1007 = vmatpush1.msra.mxu1 %v1772_v8 }
 0x973   :  { %1008 = vmatprep.subr.mxu1 %v1781_v10 }
 0x974   :  { %1009 = vmatpush1.msra.mxu1 %v1789_v12 }
 0x975   :  { %1010 = vmatprep.subr.mxu1 %v1798_v14 }
 0x976   :  { %1011 = vmatpush1.msra.mxu1 %v1807_v16 }
 0x977   :  { %1012 = vmatprep.subr.mxu1 %v1816_v18 }
 0x978   :  { %1013 = vmatpush1.msra.mxu1 %v1825_v20 }
 0x979   :  { %1014 = vmatprep.subr.mxu1 %v1834_v22  ;;  %v197_v22 = vadd.f32 %v2034_v54, %v1936_v49  ;;  %v201_v54 = vadd.f32 %v2036_v55, %v1928_v38  ;;  %v1099_v38 = vld [vmem:[%s2284_s5 + $0x38] sm:$0xff]  ;;  %v1096_v49 = vld [vmem:[%s2284_s5 + $0x20] sm:$0xff] }
 0x97a   :  { %1015 = vmatpush1.msra.mxu1 %v1843_v24  ;;  %1527 = vmatprep.subr.mxu0 %v1099_v38 }
 0x97b   :  { %1016 = vmatprep.subr.mxu1 %v1852_v26 }
 0x97c   :  { %1017 = vmatpush1.msra.mxu1 %v1861_v28 }
 0x97d   :  { %1018 = vmatprep.subr.mxu1 %v1870_v30 }
 0x97e   :  { %1019 = vmatpush1.msra.mxu1 %v1879_v32 }
 0x97f   :  { %1555 = vmatprep.subr.mxu1 %v1675_v3 }
 0xa2f   :  { %v848_v6 = vpop.f32.mrf.mxu1 }
 0xa30   :  { %v853_v8 = vadd.f32 %v848_v6, %v195_v4 }
 0xa31   :  { %v850_v16 = vpop.f32.mrf.mxu1 }
 0xa32   :  { %v1485_v10 = vmul.f32 -1.442695, %v853_v8  ;;  %v860_v18 = vadd.f32 %v1934_v47, %v850_v16  ;;  %v2194_v16 = vld [vmem:[#allocation3 + $0x20] sm:$0xff] }
 0xa34   :  { %1607 = vpow2.f32 %v1485_v10 }
 0xa41   :  { %v1608_v12 = vpop.eup %1607 }
 0xa42   :  { %v857_v14 = vadd.f32 1.0, %v1608_v12 }
 0xa44   :  { %1609 = vrcp.f32 %v857_v14  ;;  %v2190_v14 = vld [vmem:[#allocation3 + $0x18] sm:$0xff] }
 0xa51   :  { %v1610_v20 = vpop.eup %1609 }
 0xa52   :  { %v861_v24 = vmul.f32 %v1610_v20, %v860_v18  ;;  %v864_v30 = vsub.f32 1.0, %v1610_v20  ;;  %v870_v52 = vmul.f32 %v1610_v20, %v768_v25 }
 0xa54   :  { %v862_v26 = vadd.f32 %v861_v24, %v197_v22  ;;  %v1490_v24 = vld [vmem:[%s2286_s6] ss:$0 sm:$0xff] }
 0xa56   :  { %1611 = vtanh.f32 %v862_v26 }
 0xa63   :  { %v1612_v28 = vpop.eup %1611 }
 0xa64   :  { %866 = vrot.lane.b32.xlu0 %v1612_v28, %s1676_s4 }
 0xad6   :  { %v867_v32 = vpop.permute.xlu0 %866 }
 0xad7   :  { %v869_v53 = vmul.f32 %v867_v32, %v864_v30 }
 0xad9   :  { %v871_v29 = vadd.f32 %v870_v52, %v869_v53 }
 0xadb   :  { %873 = vrot.lane.b32.xlu1 %v871_v29, %s1676_s4 }
 0xb4d   :  { %v874_v31 = vpop.permute.xlu1 %873 }
 0xb4e   :  { %876 = vst.msk [vmem:[#allocation3 + $0x28] sm:$0xff] %vm352_vm1, %v874_v31  ;;  %1486 = vmatmul.mubr.msk.f32.vlgmr.msra.gmra.mxu0 %vm73_vm0, %v874_v31 }
 0xb4f   :  { %877 = vst.msk [vmem:[#allocation3 + $0x10] sm:$0xff] %vm355_vm2, %v874_v31  ;;  %1528 = vmatpush3.msra.mxu0 %v1099_v38 }
 0xb50   :  { %1529 = vmatprep.subr.mxu0 %v1098_v57 }
 0xb51   :  { %1530 = vmatpush3.msra.mxu0 %v1098_v57 }
 0xb55   :  { %v2198_v18 = vld [vmem:[#allocation3 + $0x28] sm:$0xff] }
 0xb56   :  { %v2186_v12 = vld [vmem:[#allocation3 + $0x10] sm:$0xff] }
 0xc0e   :  { %v951_v33 = vpop.f32.mrf.mxu0 }
 0xc0f   :  { %v956_v34 = vadd.f32 %v951_v33, %v201_v54 }
 0xc10   :  { %v953_v39 = vpop.f32.mrf.mxu0 }
 0xc11   :  { %v1487_v35 = vmul.f32 -1.442695, %v956_v34  ;;  %v963_v40 = vadd.f32 %v1934_v47, %v953_v39 }
 0xc13   :  { %1613 = vpow2.f32 %v1487_v35 }
 0xc20   :  { %v1614_v36 = vpop.eup %1613 }
 0xc21   :  { %v960_v37 = vadd.f32 1.0, %v1614_v36 }
 0xc23   :  { %1615 = vrcp.f32 %v960_v37 }
 0xc30   :  { %v1616_v41 = vpop.eup %1615 }
 0xc31   :  { %v964_v43 = vmul.f32 %v1616_v41, %v963_v40  ;;  %v967_v55 = vsub.f32 1.0, %v1616_v41  ;;  %v973_v46 = vmul.f32 %v1616_v41, %v871_v29  ;;  %v1499_v40 = vld [vmem:[%s2287_s7] ss:$0 sm:$0xff] }
 0xc33   :  { %v965_v1 = vadd.f32 %v964_v43, %v203_v42 }
 0xc35   :  { %1617 = vtanh.f32 %v965_v1 }
 0xc42   :  { %v1618_v44 = vpop.eup %1617 }
 0xc43   :  { %969 = vrot.lane.b32.xlu0 %v1618_v44, %s1676_s4 }
 0xcb5   :  { %v970_v45 = vpop.permute.xlu0 %969 }
 0xcb6   :  { %v972_v48 = vmul.f32 %v970_v45, %v967_v55 }
 0xcb8   :  { %v974_v59 = vadd.f32 %v973_v46, %v972_v48 }
 0xcba   :  { %976 = vrot.lane.b32.xlu1 %v974_v59, %s1676_s4 }
 0xd2c   :  { %v977_v60 = vpop.permute.xlu1 %976 }
 0xd2d   :  { %979 = vst.msk [vmem:[#allocation3 + $0x30] sm:$0xff] %vm352_vm1, %v977_v60  ;;  %1488 = vmatmul.mubr.msk.f32.vlgmr.msra.gmra.mxu1 %vm73_vm0, %v977_v60 }
 0xd2e   :  { %980 = vst.msk [vmem:[#allocation3 + $0x8] sm:$0xff] %vm355_vm2, %v977_v60  ;;  %1571 = vmatprep.mubr.msk.f32.mxu1 %vm1677_vm3, %v1675_v3 }
 0xd34   :  { %v2202_v20 = vld [vmem:[#allocation3 + $0x30] sm:$0xff] }
 0xd35   :  { %v2182_v10 = vld [vmem:[#allocation3 + $0x8] sm:$0xff] }
 0xded   :  { %v1054_v50 = vpop.f32.mrf.mxu1 }
 0xdee   :  { %v1059_v61 = vadd.f32 %v1054_v50, %v207_v56 }
 0xdef   :  { %v1056_v2 = vpop.f32.mrf.mxu1 }
 0xdf0   :  { %v1489_v62 = vmul.f32 -1.442695, %v1059_v61  ;;  %v1066_v5 = vadd.f32 %v1934_v47, %v1056_v2  ;;  %v1097_v47 = vld [vmem:[%s2284_s5 + $0x28] sm:$0xff] }
 0xdf1   :  { %1531 = vmatprep.subr.mxu0 %v1097_v47 }
 0xdf2   :  { %1619 = vpow2.f32 %v1489_v62  ;;  %1532 = vmatpush3.msra.mxu0 %v1097_v47  ;;  %v1368_v47 = vld [vmem:[%s2288_s8 + $0x38] sm:$0xff] }
 0xdf3   :  { %1533 = vmatprep.subr.mxu0 %v1096_v49  ;;  %1556 = vmatpush3.msra.mxu1 %v1368_v47 }
 0xdf4   :  { %1534 = vmatpush3.msra.mxu0 %v1096_v49  ;;  %v1367_v49 = vld [vmem:[%s2288_s8 + $0x30] sm:$0xff]  ;;  %1557 = vmatprep.subr.mxu1 %v1675_v3 }
 0xdf5   :  { %1535 = vmatprep.subr.mxu0 %v1095_v15  ;;  %1558 = vmatpush3.msra.mxu1 %v1367_v49 }
 0xdf6   :  { %1536 = vmatpush3.msra.mxu0 %v1095_v15  ;;  %1559 = vmatprep.subr.mxu1 %v1675_v3  ;;  %v1365_v15 = vld [vmem:[%s2288_s8 + $0x20] sm:$0xff] }
 0xdf7   :  { %1537 = vmatprep.subr.mxu0 %v1094_v17 }
 0xdf8   :  { %1538 = vmatpush3.msra.mxu0 %v1094_v17  ;;  %v1364_v17 = vld [vmem:[%s2288_s8 + $0x18] sm:$0xff] }
 0xdf9   :  { %1539 = vmatprep.subr.mxu0 %v1093_v51 }
 0xdfa   :  { %1540 = vmatpush3.msra.mxu0 %v1093_v51  ;;  %v1363_v51 = vld [vmem:[%s2288_s8 + $0x10] sm:$0xff] }
 0xdfb   :  { %1541 = vmatprep.subr.mxu0 %v1092_v19 }
 0xdfc   :  { %1542 = vmatpush3.msra.mxu0 %v1092_v19  ;;  %v1362_v19 = vld [vmem:[%s2288_s8 + $0x8] sm:$0xff] }
 0xdff   :  { %v1620_v63 = vpop.eup %1619 }
 0xe00   :  { %v1063_v0 = vadd.f32 1.0, %v1620_v63 }
 0xe02   :  { %1621 = vrcp.f32 %v1063_v0 }
 0xe0f   :  { %v1622_v7 = vpop.eup %1621 }
 0xe10   :  { %v1067_v11 = vmul.f32 %v1622_v7, %v1066_v5  ;;  %v1070_v21 = vsub.f32 1.0, %v1622_v7  ;;  %v1076_v25 = vmul.f32 %v1622_v7, %v974_v59 }
 0xe12   :  { %v1068_v13 = vadd.f32 %v1067_v11, %v209_v9 }
 0xe14   :  { %1623 = vtanh.f32 %v1068_v13 }
 0xe21   :  { %v1624_v58 = vpop.eup %1623 }
 0xe22   :  { %1072 = vrot.lane.b32.xlu0 %v1624_v58, %s1676_s4  ;;  %v1366_v58 = vld [vmem:[%s2288_s8 + $0x28] sm:$0xff] }
 0xe23   :  { %1560 = vmatpush3.msra.mxu1 %v1366_v58 }
 0xe24   :  { %1561 = vmatprep.subr.mxu1 %v1675_v3 }
 0xe25   :  { %1562 = vmatpush3.msra.mxu1 %v1365_v15 }
 0xe26   :  { %1563 = vmatprep.subr.mxu1 %v1675_v3 }
 0xe27   :  { %1564 = vmatpush3.msra.mxu1 %v1364_v17 }
 0xe28   :  { %1565 = vmatprep.subr.mxu1 %v1675_v3 }
 0xe29   :  { %1566 = vmatpush3.msra.mxu1 %v1363_v51 }
 0xe2a   :  { %1567 = vmatprep.subr.mxu1 %v1675_v3 }
 0xe2b   :  { %1568 = vmatpush3.msra.mxu1 %v1362_v19 }
 0xe2c   :  { %1569 = vmatprep.subr.mxu1 %v1675_v3 }
 0xe94   :  { %v1073_v23 = vpop.permute.xlu0 %1072 }
 0xe95   :  { %v1075_v27 = vmul.f32 %v1073_v23, %v1070_v21  ;;  %v1361_v21 = vld [vmem:[%s2288_s8] sm:$0xff] }
 0xe96   :  { %1570 = vmatpush3.msra.mxu1 %v1361_v21 }
 0xe97   :  { %v1077_v4 = vadd.f32 %v1076_v25, %v1075_v27 }
 0xe99   :  { %1079 = vrot.lane.b32.xlu1 %v1077_v4, %s1676_s4 }
 0xf0b   :  { %v1080_v6 = vpop.permute.xlu1 %1079 }
 0xf0c   :  { %1082 = vst.msk [vmem:[#allocation3 + $0x38] sm:$0xff] %vm352_vm1, %v1080_v6 }
 0xf0d   :  { %1083 = vst.msk [vmem:[#allocation3] sm:$0xff] %vm355_vm2, %v1080_v6 }
 0xf0e   :  { %1450 = vst.msk [vmem:[%s2285_s11] sm:$0xff] %vm73_vm0, %v1080_v6 }
 0xf13   :  { %v2206_v22 = vld [vmem:[#allocation3 + $0x38] sm:$0xff] }
 0xf14   :  { %v2178_v8 = vld [vmem:[#allocation3] sm:$0xff] }
 0xf15   :  { %1543 = vmatprep.mubr.msk.f32.mxu0 %vm73_vm0, %v2178_v8 }
 0xf16   :  { %1544 = vmatmul.mubr.msk.f32.vlgmr.msra.gmra.mxu0 %vm73_vm0, %v2182_v10 }
 0xf17   :  { %1546 = vmatprep.mubr.msk.f32.mxu0 %vm73_vm0, %v2186_v12 }
 0xf1a   :  { %1547 = vmatmul.mubr.msk.f32.gmra.mxu0 %vm73_vm0, %v2190_v14 }
 0xf1b   :  { %1549 = vmatprep.mubr.msk.f32.mxu0 %vm73_vm0, %v2194_v16 }
 0xf1e   :  { %1550 = vmatmul.mubr.msk.f32.gmra.mxu0 %vm73_vm0, %v2198_v18 }
 0xf1f   :  { %1552 = vmatprep.mubr.msk.f32.mxu0 %vm73_vm0, %v2202_v20 }
 0xf22   :  { %1553 = vmatmul.mubr.msk.f32.gmra.mxu0 %vm73_vm0, %v2206_v22 }
 0xfd6   :  { %v1545_v26 = vpop.f32.mrf.mxu0 }
 0xfd7   :  { %v1203_v28 = vadd.f32 %v1545_v26, %v1490_v24 }
 0xfd8   :  { %v1197_v30 = vpop.f32.mrf.mxu0 }
 0xfd9   :  { %1625 = vtanh.f32 %v1203_v28  ;;  %v1198_v32 = vadd.f32 %v1490_v24, %v1197_v30 }
 0xfda   :  { %v1548_v52 = vpop.f32.mrf.mxu0 }
 0xfdb   :  { %1627 = vtanh.f32 %v1198_v32  ;;  %v1213_v53 = vadd.f32 %v1548_v52, %v1490_v24 }
 0xfdc   :  { %v1207_v29 = vpop.f32.mrf.mxu0 }
 0xfdd   :  { %1629 = vtanh.f32 %v1213_v53  ;;  %v1208_v31 = vadd.f32 %v1490_v24, %v1207_v29 }
 0xfde   :  { %v1551_v54 = vpop.f32.mrf.mxu0 }
 0xfdf   :  { %1631 = vtanh.f32 %v1208_v31  ;;  %v1223_v33 = vadd.f32 %v1551_v54, %v1490_v24 }
 0xfe0   :  { %v1217_v34 = vpop.f32.mrf.mxu0 }
 0xfe1   :  { %v1218_v35 = vadd.f32 %v1490_v24, %v1217_v34  ;;  %1633 = vtanh.f32 %v1223_v33 }
 0xfe2   :  { %v1554_v36 = vpop.f32.mrf.mxu0 }
 0xfe3   :  { %1635 = vtanh.f32 %v1218_v35  ;;  %v1233_v37 = vadd.f32 %v1554_v36, %v1490_v24 }
 0xfe4   :  { %v1227_v39 = vpop.f32.mrf.mxu0 }
 0xfe5   :  { %v1228_v41 = vadd.f32 %v1490_v24, %v1227_v39  ;;  %1637 = vtanh.f32 %v1233_v37 }
 0xfe6   :  { %v1626_v42 = vpop.eup %1625 }
 0xfe7   :  { %1639 = vtanh.f32 %v1228_v41  ;;  %v1252_v43 = vmul.f32 %v1626_v42, %v1499_v40 }
 0xfe8   :  { %v1628_v1 = vpop.eup %1627 }
 0xfe9   :  { %v1262_v44 = vsel %vm73_vm0, %v1252_v43, 0.0  ;;  %v1251_v55 = vmul.f32 %v1628_v1, %v1499_v40 }
 0xfea   :  { %v1630_v45 = vpop.eup %1629  ;;  %1263 = vadd.xlane.f32.xlu1 %v1262_v44 }
 0xfeb   :  { %v1259_v46 = vsel %vm73_vm0, %v1251_v55, 0.0  ;;  %v1254_v48 = vmul.f32 %v1630_v45, %v1499_v40 }
 0xfec   :  { %v1632_v59 = vpop.eup %1631  ;;  %1260 = vadd.xlane.f32.xlu0 %v1259_v46 }
 0xfed   :  { %v1268_v56 = vsel %vm73_vm0, %v1254_v48, 0.0  ;;  %v1253_v50 = vmul.f32 %v1632_v59, %v1499_v40 }
 0xfee   :  { %v1634_v60 = vpop.eup %1633 }
 0xfef   :  { %v1265_v2 = vsel %vm73_vm0, %v1253_v50, 0.0  ;;  %v1256_v5 = vmul.f32 %v1634_v60, %v1499_v40 }
 0xff0   :  { %v1636_v61 = vpop.eup %1635  ;;  %1269 = vadd.xlane.f32.xlu0 %v1268_v56 }
 0xff1   :  { %v1255_v62 = vmul.f32 %v1636_v61, %v1499_v40  ;;  %v1274_v13 = vsel %vm73_vm0, %v1256_v5, 0.0 }
 0xff2   :  { %v1638_v63 = vpop.eup %1637 }
 0xff3   :  { %v1271_v0 = vsel %vm73_vm0, %v1255_v62, 0.0  ;;  %v1258_v38 = vmul.f32 %v1638_v63, %v1499_v40 }
 0xff4   :  { %v1640_v7 = vpop.eup %1639  ;;  %1272 = vadd.xlane.f32.xlu1 %v1271_v0  ;;  %1266 = vadd.xlane.f32.xlu0 %v1265_v2 }
 0xff5   :  { %v1257_v9 = vmul.f32 %v1640_v7, %v1499_v40  ;;  %v1280_v57 = vsel %vm73_vm0, %v1258_v38, 0.0 }
 0xff7   :  { %v1277_v11 = vsel %vm73_vm0, %v1257_v9, 0.0 }
 0xff8   :  { %1278 = vadd.xlane.f32.xlu1 %v1277_v11  ;;  %1275 = vadd.xlane.f32.xlu0 %v1274_v13 }
 0xffc   :  { %1281 = vadd.xlane.f32.xlu0 %v1280_v57 }
0x1073   :  { %v1264_v25 = vpop.xlane.xlu1 %1263 }
0x1074   :  { %1641 = vtanh.f32 %v1264_v25 }
0x1075   :  { %v1261_v23 = vpop.xlane.xlu0 %1260 }
0x1076   :  { %1643 = vtanh.f32 %v1261_v23 }
0x1079   :  { %v1270_v27 = vpop.xlane.xlu0 %1269 }
0x107a   :  { %1645 = vtanh.f32 %v1270_v27 }
0x107d   :  { %v1273_v4 = vpop.xlane.xlu1 %1272  ;;  %v1267_v6 = vpop.xlane.xlu0 %1266 }
0x107e   :  { %1647 = vtanh.f32 %v1273_v4 }
0x1081   :  { %v1279_v24 = vpop.xlane.xlu1 %1278  ;;  %v1276_v26 = vpop.xlane.xlu0 %1275 }
0x1082   :  { %1649 = vtanh.f32 %v1276_v26  ;;  %v1642_v30 = vpop.eup %1641 }
0x1083   :  { %1651 = vtanh.f32 %v1279_v24  ;;  %v1644_v32 = vpop.eup %1643 }
0x1084   :  { %1653 = vtanh.f32 %v1267_v6 }
0x1085   :  { %v1282_v28 = vpop.xlane.xlu0 %1281 }
0x1086   :  { %1655 = vtanh.f32 %v1282_v28 }
0x1087   :  { %v1646_v3 = vpop.eup %1645 }
0x108b   :  { %v1648_v52 = vpop.eup %1647 }
0x108c   :  { %v1291_v34 = vmax.f32 %v1644_v32, %v1648_v52 }
0x108f   :  { %v1650_v53 = vpop.eup %1649 }
0x1090   :  { %v1652_v29 = vpop.eup %1651  ;;  %v1292_v54 = vmax.f32 %v1642_v30, %v1650_v53 }
0x1091   :  { %v1654_v31 = vpop.eup %1653 }
0x1092   :  { %v1293_v35 = vmax.f32 %v1654_v31, %v1652_v29  ;;  %v1295_v37 = vmax.f32 %v1291_v34, %v1292_v54 }
0x1093   :  { %v1656_v33 = vpop.eup %1655 }
0x1094   :  { %v1294_v36 = vmax.f32 %v1646_v3, %v1656_v33 }
0x1096   :  { %v1296_v39 = vmax.f32 %v1293_v35, %v1294_v36 }
0x1098   :  { %v1297_v40 = vmax.f32 %v1295_v37, %v1296_v39 }
0x109a   :  { %v1298_v41 = vsub.f32 %v1644_v32, %v1297_v40  ;;  %v1299_v42 = vsub.f32 %v1642_v30, %v1297_v40  ;;  %v1300_v43 = vsub.f32 %v1654_v31, %v1297_v40  ;;  %v1301_v1 = vsub.f32 %v1646_v3, %v1297_v40 }
0x109b   :  { %v1302_v45 = vsub.f32 %v1648_v52, %v1297_v40  ;;  %v1303_v48 = vsub.f32 %v1650_v53, %v1297_v40  ;;  %v1304_v60 = vsub.f32 %v1652_v29, %v1297_v40  ;;  %v1305_v50 = vsub.f32 %v1656_v33, %v1297_v40 }
0x109c   :  { %v1306_v44 = vmul.f32 1.442695, %v1298_v41  ;;  %v1308_v55 = vmul.f32 1.442695, %v1299_v42  ;;  %v1310_v46 = vmul.f32 1.442695, %v1300_v43 }
0x109d   :  { %v1312_v59 = vmul.f32 1.442695, %v1301_v1  ;;  %v1314_v56 = vmul.f32 1.442695, %v1302_v45  ;;  %v1316_v61 = vmul.f32 1.442695, %v1303_v48 }
0x109e   :  { %1657 = vpow2.f32 %v1306_v44  ;;  %v1318_v62 = vmul.f32 1.442695, %v1304_v60  ;;  %v1320_v63 = vmul.f32 1.442695, %v1305_v50 }
0x109f   :  { %1659 = vpow2.f32 %v1308_v55 }
0x10a0   :  { %1661 = vpow2.f32 %v1310_v46 }
0x10a1   :  { %1663 = vpow2.f32 %v1312_v59 }
0x10a2   :  { %1665 = vpow2.f32 %v1314_v56 }
0x10a3   :  { %1667 = vpow2.f32 %v1316_v61 }
0x10a4   :  { %1669 = vpow2.f32 %v1318_v62 }
0x10a5   :  { %1671 = vpow2.f32 %v1320_v63 }
0x10ab   :  { %v1658_v0 = vpop.eup %1657 }
0x10ac   :  { %v1660_v2 = vpop.eup %1659 }
0x10ad   :  { %v1322_v5 = vadd.f32 %v1660_v2, %v1658_v0  ;;  %v1662_v7 = vpop.eup %1661 }
0x10ae   :  { %v1664_v11 = vpop.eup %1663 }
0x10af   :  { %v1323_v9 = vadd.f32 %v1662_v7, %v1322_v5  ;;  %v1666_v38 = vpop.eup %1665 }
0x10b0   :  { %v1668_v47 = vpop.eup %1667 }
0x10b1   :  { %v1324_v13 = vadd.f32 %v1664_v11, %v1323_v9  ;;  %v1670_v58 = vpop.eup %1669 }
0x10b2   :  { %v1672_v17 = vpop.eup %1671 }
0x10b3   :  { %v1325_v57 = vadd.f32 %v1666_v38, %v1324_v13 }
0x10b5   :  { %v1326_v49 = vadd.f32 %v1668_v47, %v1325_v57 }
0x10b7   :  { %v1327_v15 = vadd.f32 %v1670_v58, %v1326_v49 }
0x10b9   :  { %v1328_v51 = vadd.f32 %v1672_v17, %v1327_v15 }
0x10bb   :  { %1673 = vrcp.f32 %v1328_v51 }
0x10c8   :  { %v1674_v19 = vpop.eup %1673 }
0x10c9   :  { %v1330_v21 = vmul.f32 %v1674_v19, %v1658_v0  ;;  %v1331_v23 = vmul.f32 %v1674_v19, %v1660_v2  ;;  %v1332_v25 = vmul.f32 %v1674_v19, %v1662_v7  ;;  %v1333_v27 = vmul.f32 %v1674_v19, %v1664_v11 }
0x10ca   :  { %v1334_v4 = vmul.f32 %v1674_v19, %v1666_v38  ;;  %v1335_v28 = vmul.f32 %v1674_v19, %v1668_v47  ;;  %v1336_v53 = vmul.f32 %v1674_v19, %v1670_v58  ;;  %v1337_v33 = vmul.f32 %v1674_v19, %v1672_v17 }
0x10cb   :  { %v1338_v6 = vmul.f32 %v1330_v21, %v2178_v8  ;;  %v1339_v24 = vmul.f32 %v1331_v23, %v2182_v10  ;;  %v1340_v26 = vmul.f32 %v1332_v25, %v2186_v12  ;;  %v1341_v30 = vmul.f32 %v1333_v27, %v2190_v14 }
0x10cc   :  { %v1342_v29 = vmul.f32 %v1334_v4, %v2194_v16  ;;  %v1343_v8 = vmul.f32 %v1335_v28, %v2198_v18  ;;  %v1344_v34 = vmul.f32 %v1336_v53, %v2202_v20  ;;  %v1345_v36 = vmul.f32 %v1337_v33, %v2206_v22  ;;  %v1500_v18 = vld [vmem:[%s2289_s9] ss:$0 sm:$0xff] }
0x10cd   :  { %v1346_v32 = vsel %vm73_vm0, %v1338_v6, 0.0  ;;  %v1347_v3 = vsel %vm73_vm0, %v1339_v24, 0.0  ;;  %v1349_v31 = vsel %vm73_vm0, %v1340_v26, 0.0  ;;  %v1351_v10 = vsel %vm73_vm0, %v1341_v30, 0.0 }
0x10ce   :  { %v1348_v52 = vadd.f32 %v1347_v3, %v1346_v32  ;;  %v1353_v14 = vsel %vm73_vm0, %v1342_v29, 0.0  ;;  %v1355_v37 = vsel %vm73_vm0, %v1343_v8, 0.0  ;;  %v1357_v16 = vsel %vm73_vm0, %v1344_v34, 0.0 }
0x10cf   :  { %v1359_v41 = vsel %vm73_vm0, %v1345_v36, 0.0 }
0x10d0   :  { %v1350_v54 = vadd.f32 %v1349_v31, %v1348_v52 }
0x10d2   :  { %v1352_v12 = vadd.f32 %v1351_v10, %v1350_v54 }
0x10d4   :  { %v1354_v35 = vadd.f32 %v1353_v14, %v1352_v12 }
0x10d6   :  { %v1356_v39 = vadd.f32 %v1355_v37, %v1354_v35 }
0x10d8   :  { %v1358_v40 = vadd.f32 %v1357_v16, %v1356_v39 }
0x10da   :  { %v1360_v42 = vadd.f32 %v1359_v41, %v1358_v40 }
0x10dc   :  { %1572 = vmatmul.mubr.msk.f32.vlgmr.msra.gmra.mxu1 %vm73_vm0, %v1360_v42 }
0x119c   :  { %v1445_v20 = vpop.f32.mrf.mxu1 }
0x119d   :  { %v1446_v43 = vadd.f32 %v1500_v18, %v1445_v20 }
0x119e   :  { %v1573_v1 = vpop.f32.mrf.mxu1 }
0x119f   :  { %1449 = vst [vmem:[%s2290_s10] sm:$0xff] %v1446_v43 }

</bundles_post_ra>
